<compile_context>
chip_gen: v7x
topology: tpu7x:2x2x1
jax: 0.10.0
libtpu: 0.0.40
codegen_flags: <defaults>
</compile_context>

<pallas_src>
import functools

import numpy as np
import jax
import jax.numpy as jnp
from jax.experimental import pallas as pl
from jax.experimental.pallas import tpu as pltpu

NUM_HEADS = 8
PHI = (1.0 + 5.0 ** 0.5) / 2.0
LN_EPS = 1e-5


def _fractal_kernel(x_ref, wq_ref, wk_ref, wv_ref, wo_ref, rp_ref, o_ref, ctx_ref,
                    *, num_heads, head_dim, compute_dtype):
    bt, sl, d = x_ref.shape
    rows = bt * sl
    exact_div = np.dtype(compute_dtype) == np.dtype(np.float32)

    # Packed row params (f32): 0=bq 1=bk 2=bv 3=bo 4=gamma 5=beta 6=phi (7=padding).
    rp = rp_ref[...]
    bq, bk, bv, bo = rp[0:1, :], rp[1:2, :], rp[2:3, :], rp[3:4, :]
    gamma, beta, phi = rp[4:5, :], rp[5:6, :], rp[6:7, :]

    # f32 copy of the input rows is the only full-precision activation we keep live
    # through the head loop (needed for the residual + LayerNorm).
    x2 = x_ref[...].astype(jnp.float32).reshape(rows, d)
    xc = x2.astype(compute_dtype)

    # Projections. Weights arrive already in compute_dtype. Scales are folded:
    #   1/sqrt(head_dim) into Q, phi^(-h) per head column block into V (both linear
    #   w.r.t. the post-softmax matmul, so this is exact).
    q = ((jnp.dot(xc, wq_ref[...], preferred_element_type=jnp.float32) + bq)
         * jnp.float32(head_dim ** -0.5)).astype(compute_dtype).reshape(bt, sl, d)
    k = (jnp.dot(xc, wk_ref[...], preferred_element_type=jnp.float32) + bk
         ).astype(compute_dtype).reshape(bt, sl, d)
    v = ((jnp.dot(xc, wv_ref[...], preferred_element_type=jnp.float32) + bv) * phi
         ).astype(compute_dtype).reshape(bt, sl, d)

    # Per-head attention; each head's context lands in the (rows, D) scratch at its
    # lane offset so the output projection below is a single dense K=D matmul.
    for h in range(num_heads):
        lo = h * head_dim
        hi = lo + head_dim
        s = jnp.einsum('bqd,bkd->bqk', q[:, :, lo:hi], k[:, :, lo:hi],
                       preferred_element_type=jnp.float32)          # (bt, sl, sl)
        s = s - jnp.max(s, axis=-1, keepdims=True)
        e = jnp.exp(s)
        denom = jnp.sum(e, axis=-1, keepdims=True)
        if exact_div:
            p = e / denom                                            # tight f32 path
        else:
            p = e * pl.reciprocal(denom, approx=True)                # EUP, free slot
        ctx = jnp.einsum('bqk,bkd->bqd', p.astype(compute_dtype), v[:, :, lo:hi],
                         preferred_element_type=jnp.float32)         # (bt, sl, hd)
        ctx_ref[:, lo:hi] = ctx.reshape(rows, head_dim).astype(compute_dtype)

    # Residual + out-proj bias + ONE dense output projection (K = D).
    y = x2 + bo + jnp.dot(ctx_ref[...], wo_ref[...],
                          preferred_element_type=jnp.float32)

    # LayerNorm over features (f32, biased variance, eps = 1e-5).
    mean = jnp.mean(y, axis=-1, keepdims=True)
    c = y - mean
    var = jnp.mean(c * c, axis=-1, keepdims=True)
    result = c * jax.lax.rsqrt(var + LN_EPS) * gamma + beta

    o_ref[...] = result.reshape(bt, sl, d).astype(o_ref.dtype)


def _pick_block_b(B, S, D, compute_itemsize, vmem_budget_bytes):
    """Largest batch tile bt (a divisor of B) whose working set fits the VMEM budget,
    capped at B // 2 when B >= 2 so the grid always has >= 2 parallel steps (v7x has
    2 TensorCores; the extra grid step costs ~0.35 us on single-TC parts)."""
    weight_bytes = 4 * D * D * compute_itemsize + 8 * D * 4   # single-buffered

    def per_step(bt):
        rows = bt * S
        xio = 2 * 2 * rows * D * 4                 # x + out blocks, double-buffered f32
        qkv = 3 * rows * D * compute_itemsize      # q/k/v live set
        ctx = rows * D * compute_itemsize          # context scratch
        f32act = 2 * rows * D * 4                  # residual copy + y accumulator
        scores = 2 * bt * S * S * 4                # per-head scores + exp (f32)
        return xio + qkv + ctx + f32act + scores

    max_bt = max(B // 2, 1)
    bt = 1
    for cand in range(1, max_bt + 1):
        if B % cand == 0 and weight_bytes + per_step(cand) <= vmem_budget_bytes:
            bt = cand
    return bt


def fractal_scale_processor(x, params, *, compute_dtype=jnp.bfloat16,
                            block_b=None, vmem_budget_bytes=40 * 1024 * 1024):
    """x: (B, S, D) float32. params: dict of pre-transposed weights & biases.

    vmem_budget_bytes: activation/weight VMEM budget used to choose the batch tile.
    The default (40 MiB) is safe on v7x (64 MiB VMEM); raise it on v5e/v6e (128 MiB)
    for larger tiles.
    """
    B, S, D = x.shape
    head_dim = D // NUM_HEADS
    assert head_dim * NUM_HEADS == D

    itemsize = np.dtype(compute_dtype).itemsize
    bt = block_b if block_b is not None else _pick_block_b(B, S, D, itemsize,
                                                           vmem_budget_bytes)
    while B % bt:
        bt -= 1

    # Pre-cast weights outside the kernel: halves weight DMA + resident VMEM for the
    # default bf16 path and removes four full-matrix cast passes from the VPU.
    wq = params["wq"].astype(compute_dtype)
    wk = params["wk"].astype(compute_dtype)
    wv = params["wv"].astype(compute_dtype)
    wo = params["wo"].astype(compute_dtype)

    # Per-column fractal scale: columns [h*hd, (h+1)*hd) carry phi^(-h).
    phi_scale = jnp.repeat(
        jnp.asarray([PHI ** (-h) for h in range(NUM_HEADS)], dtype=jnp.float32),
        head_dim).reshape(1, D)

    # Pack all (1, D) row vectors into one (8, D) f32 block (one DMA, one window).
    rowparams = jnp.concatenate(
        [params["bq"], params["bk"], params["bv"], params["bo"],
         params["gamma"], params["beta"], phi_scale,
         jnp.zeros((1, D), jnp.float32)], axis=0)

    kernel = functools.partial(_fractal_kernel, num_heads=NUM_HEADS,
                               head_dim=head_dim, compute_dtype=compute_dtype)

    # Grid-invariant operands: constant index map + single buffer (no point
    # double-buffering a block whose index never changes).
    def invariant(shape):
        return pl.BlockSpec(shape, lambda b: (0,) * len(shape),
                            pipeline_mode=pl.Buffered(buffer_count=1))

    vmem_limit = int(max(vmem_budget_bytes + 16 * 1024 * 1024, 32 * 1024 * 1024))

    return pl.pallas_call(
        kernel,
        out_shape=jax.ShapeDtypeStruct((B, S, D), x.dtype),
        grid=(B // bt,),
        in_specs=[
            pl.BlockSpec((bt, S, D), lambda b: (b, 0, 0)),   # x
            invariant((D, D)),                               # wq (in, out)
            invariant((D, D)),                               # wk
            invariant((D, D)),                               # wv
            invariant((D, D)),                               # wo
            invariant((8, D)),                               # packed row params
        ],
        out_specs=pl.BlockSpec((bt, S, D), lambda b: (b, 0, 0)),
        scratch_shapes=[pltpu.VMEM((bt * S, D), compute_dtype)],   # per-head ctx slab
        compiler_params=pltpu.CompilerParams(
            dimension_semantics=("parallel",),
            vmem_limit_bytes=vmem_limit),
    )(x, wq, wk, wv, wo, rowparams)


def _reference(x, params):
    """Pure-JAX f32 reference mirroring the PyTorch forward."""
    B, S, D = x.shape
    hd = D // NUM_HEADS

    def proj(w, b):
        return x @ w + b  # (B, S, D)

    q = proj(params["wq"], params["bq"]).reshape(B, S, NUM_HEADS, hd).transpose(0, 2, 1, 3)
    k = proj(params["wk"], params["bk"]).reshape(B, S, NUM_HEADS, hd).transpose(0, 2, 1, 3)
    v = proj(params["wv"], params["bv"]).reshape(B, S, NUM_HEADS, hd).transpose(0, 2, 1, 3)

    attn = jnp.einsum("bhqd,bhkd->bhqk", q, k) * (hd ** -0.5)
    attn = jax.nn.softmax(attn, axis=-1)
    scales = jnp.array([PHI ** (-i) for i in range(NUM_HEADS)], dtype=jnp.float32)
    attn = attn * scales.reshape(1, NUM_HEADS, 1, 1)
    out = jnp.einsum("bhqk,bhkd->bhqd", attn, v)
    out = out.transpose(0, 2, 1, 3).reshape(B, S, D)
    out = out @ params["wo"] + params["bo"]
    y = out + x
    mean = jnp.mean(y, axis=-1, keepdims=True)
    var = jnp.mean((y - mean) ** 2, axis=-1, keepdims=True)
    return (y - mean) / jnp.sqrt(var + LN_EPS) * params["gamma"] + params["beta"]


def _init_params(key, dim):
    ks = jax.random.split(key, 8)
    std = 0.05
    return {
        "wq": jax.random.normal(ks[0], (dim, dim), jnp.float32) * std,
        "wk": jax.random.normal(ks[1], (dim, dim), jnp.float32) * std,
        "wv": jax.random.normal(ks[2], (dim, dim), jnp.float32) * std,
        "wo": jax.random.normal(ks[3], (dim, dim), jnp.float32) * std,
        "bq": jax.random.normal(ks[4], (1, dim), jnp.float32) * std,
        "bk": jax.random.normal(ks[5], (1, dim), jnp.float32) * std,
        "bv": jax.random.normal(ks[6], (1, dim), jnp.float32) * std,
        "bo": jax.random.normal(ks[7], (1, dim), jnp.float32) * std,
        "gamma": jnp.ones((1, dim), jnp.float32),   # nn.LayerNorm default weight
        "beta": jnp.zeros((1, dim), jnp.float32),   # nn.LayerNorm default bias
    }


if __name__ == "__main__":
    B, S, D = 2, 8, 32   # batch=2, seq=8, dim=32 (num_heads=8 -> head_dim=4)
    key = jax.random.PRNGKey(0)
    kx, kp = jax.random.split(key)
    x = jax.random.normal(kx, (B, S, D), jnp.float32)
    params = _init_params(kp, D)

    ref = _reference(x, params)

    # Default fast path: bf16 MXU inputs, f32 accumulation (numerics relaxed).
    out = jax.block_until_ready(fractal_scale_processor(x, params))
    assert out.shape == (B, S, D)
    assert jnp.max(jnp.abs(out - ref)) < 2e-2, "bf16-path mismatch vs reference"

    # f32 compute path: tight check of forward semantics (exact softmax divide).
    out_f32 = jax.block_until_ready(
        fractal_scale_processor(x, params, compute_dtype=jnp.float32))
    assert jnp.max(jnp.abs(out_f32 - ref)) < 1e-3, "f32-path mismatch vs reference"

    print("KERNEL_OK")
</pallas_src>

<mosaic_0001>
module attributes {stable_mosaic.version = 11 : i64} {
  func.func @_fractal_kernel(%arg0: i32, %arg1: memref<1x8x32xf32, #tpu.memory_space<vmem>>, %arg2: memref<32x32xbf16, #tpu.memory_space<vmem>>, %arg3: memref<32x32xbf16, #tpu.memory_space<vmem>>, %arg4: memref<32x32xbf16, #tpu.memory_space<vmem>>, %arg5: memref<32x32xbf16, #tpu.memory_space<vmem>>, %arg6: memref<8x32xf32, #tpu.memory_space<vmem>>, %arg7: memref<1x8x32xf32, #tpu.memory_space<vmem>>, %arg8: memref<8x32xbf16, #tpu.memory_space<vmem>>) attributes {dimension_semantics = [#tpu.dimension_semantics<parallel>], iteration_bounds = array<i64: 2>, scalar_prefetch = 0 : i64, scratch_operands = 1 : i64, tpu.core_type = #tpu.core_type<tc>, window_params = [{transform_indices = @transform_0, window_bounds = array<i64: 1, 8, 32>}, {pipeline_mode = #tpu.pipeline_mode<synchronous>, transform_indices = @transform_1, window_bounds = array<i64: 32, 32>}, {pipeline_mode = #tpu.pipeline_mode<synchronous>, transform_indices = @transform_2, window_bounds = array<i64: 32, 32>}, {pipeline_mode = #tpu.pipeline_mode<synchronous>, transform_indices = @transform_3, window_bounds = array<i64: 32, 32>}, {pipeline_mode = #tpu.pipeline_mode<synchronous>, transform_indices = @transform_4, window_bounds = array<i64: 32, 32>}, {pipeline_mode = #tpu.pipeline_mode<synchronous>, transform_indices = @transform_5, window_bounds = array<i64: 8, 32>}, {transform_indices = @transform_6, window_bounds = array<i64: 1, 8, 32>}]} {
    %c0 = arith.constant 0 : index
    %c0_0 = arith.constant 0 : index
    %0 = vector.load %arg6[%c0, %c0_0] : memref<8x32xf32, #tpu.memory_space<vmem>>, vector<8x32xf32>
    %1 = vector.extract_strided_slice %0 {offsets = [0, 0], sizes = [1, 32], strides = [1, 1]} : vector<8x32xf32> to vector<1x32xf32>
    %2 = vector.extract_strided_slice %0 {offsets = [1, 0], sizes = [1, 32], strides = [1, 1]} : vector<8x32xf32> to vector<1x32xf32>
    %3 = vector.extract_strided_slice %0 {offsets = [2, 0], sizes = [1, 32], strides = [1, 1]} : vector<8x32xf32> to vector<1x32xf32>
    %4 = vector.extract_strided_slice %0 {offsets = [3, 0], sizes = [1, 32], strides = [1, 1]} : vector<8x32xf32> to vector<1x32xf32>
    %5 = vector.extract_strided_slice %0 {offsets = [4, 0], sizes = [1, 32], strides = [1, 1]} : vector<8x32xf32> to vector<1x32xf32>
    %6 = vector.extract_strided_slice %0 {offsets = [5, 0], sizes = [1, 32], strides = [1, 1]} : vector<8x32xf32> to vector<1x32xf32>
    %7 = vector.extract_strided_slice %0 {offsets = [6, 0], sizes = [1, 32], strides = [1, 1]} : vector<8x32xf32> to vector<1x32xf32>
    %c0_1 = arith.constant 0 : index
    %c0_2 = arith.constant 0 : index
    %c0_3 = arith.constant 0 : index
    %8 = vector.load %arg1[%c0_1, %c0_2, %c0_3] : memref<1x8x32xf32, #tpu.memory_space<vmem>>, vector<1x8x32xf32>
    %9 = vector.shape_cast %8 : vector<1x8x32xf32> to vector<8x32xf32>
    %10 = arith.truncf %9 : vector<8x32xf32> to vector<8x32xbf16>
    %c0_4 = arith.constant 0 : index
    %c0_5 = arith.constant 0 : index
    %11 = vector.load %arg2[%c0_4, %c0_5] : memref<32x32xbf16, #tpu.memory_space<vmem>>, vector<32x32xbf16>
    %cst = arith.constant dense<0.000000e+00> : vector<8x32xf32>
    %12 = tpu.matmul %10, %11, %cst {dimension_numbers = #tpu.dot_dimension_numbers<[1], [0], [0], [1], [0, 0, 1, 1], [], []>} : vector<8x32xbf16>, vector<32x32xbf16>, vector<8x32xf32> -> vector<8x32xf32>
    %13 = vector.broadcast %1 : vector<1x32xf32> to vector<8x32xf32>
    %14 = arith.addf %12, %13 : vector<8x32xf32>
    %cst_6 = arith.constant 5.000000e-01 : f32
    %15 = vector.broadcast %cst_6 : f32 to vector<8x32xf32>
    %16 = arith.mulf %14, %15 : vector<8x32xf32>
    %17 = arith.truncf %16 : vector<8x32xf32> to vector<8x32xbf16>
    %18 = vector.shape_cast %17 : vector<8x32xbf16> to vector<1x8x32xbf16>
    %c0_7 = arith.constant 0 : index
    %c0_8 = arith.constant 0 : index
    %19 = vector.load %arg3[%c0_7, %c0_8] : memref<32x32xbf16, #tpu.memory_space<vmem>>, vector<32x32xbf16>
    %cst_9 = arith.constant dense<0.000000e+00> : vector<8x32xf32>
    %20 = tpu.matmul %10, %19, %cst_9 {dimension_numbers = #tpu.dot_dimension_numbers<[1], [0], [0], [1], [0, 0, 1, 1], [], []>} : vector<8x32xbf16>, vector<32x32xbf16>, vector<8x32xf32> -> vector<8x32xf32>
    %21 = vector.broadcast %2 : vector<1x32xf32> to vector<8x32xf32>
    %22 = arith.addf %20, %21 : vector<8x32xf32>
    %23 = arith.truncf %22 : vector<8x32xf32> to vector<8x32xbf16>
    %24 = vector.shape_cast %23 : vector<8x32xbf16> to vector<1x8x32xbf16>
    %c0_10 = arith.constant 0 : index
    %c0_11 = arith.constant 0 : index
    %25 = vector.load %arg4[%c0_10, %c0_11] : memref<32x32xbf16, #tpu.memory_space<vmem>>, vector<32x32xbf16>
    %cst_12 = arith.constant dense<0.000000e+00> : vector<8x32xf32>
    %26 = tpu.matmul %10, %25, %cst_12 {dimension_numbers = #tpu.dot_dimension_numbers<[1], [0], [0], [1], [0, 0, 1, 1], [], []>} : vector<8x32xbf16>, vector<32x32xbf16>, vector<8x32xf32> -> vector<8x32xf32>
    %27 = vector.broadcast %3 : vector<1x32xf32> to vector<8x32xf32>
    %28 = arith.addf %26, %27 : vector<8x32xf32>
    %29 = vector.broadcast %7 : vector<1x32xf32> to vector<8x32xf32>
    %30 = arith.mulf %28, %29 : vector<8x32xf32>
    %31 = arith.truncf %30 : vector<8x32xf32> to vector<8x32xbf16>
    %32 = vector.shape_cast %31 : vector<8x32xbf16> to vector<1x8x32xbf16>
    %33 = vector.extract_strided_slice %18 {offsets = [0, 0, 0], sizes = [1, 8, 4], strides = [1, 1, 1]} : vector<1x8x32xbf16> to vector<1x8x4xbf16>
    %34 = vector.extract_strided_slice %24 {offsets = [0, 0, 0], sizes = [1, 8, 4], strides = [1, 1, 1]} : vector<1x8x32xbf16> to vector<1x8x4xbf16>
    "tpu.trace_start"() <{level = 10 : i32, message = "bqd,bkd->bqk"}> : () -> ()
    %cst_13 = arith.constant dense<0.000000e+00> : vector<1x8x8xf32>
    %35 = tpu.matmul %33, %34, %cst_13 {dimension_numbers = #tpu.dot_dimension_numbers<[2], [2], [1], [1], [0, 0, 0, 1, 1, 1], [0], [0]>} : vector<1x8x4xbf16>, vector<1x8x4xbf16>, vector<1x8x8xf32> -> vector<1x8x8xf32>
    "tpu.trace_stop"() : () -> ()
    %cst_14 = arith.constant dense<0xFF800000> : vector<1x8xf32>
    %36 = vector.multi_reduction <maximumf>, %35, %cst_14 [2] : vector<1x8x8xf32> to vector<1x8xf32>
    %37 = vector.shape_cast %36 : vector<1x8xf32> to vector<1x8x1xf32>
    %38 = vector.broadcast %37 : vector<1x8x1xf32> to vector<1x8x8xf32>
    %39 = arith.subf %35, %38 : vector<1x8x8xf32>
    %40 = math.exp %39 : vector<1x8x8xf32>
    %cst_15 = arith.constant dense<0.000000e+00> : vector<1x8xf32>
    %41 = vector.multi_reduction <add>, %40, %cst_15 [2] : vector<1x8x8xf32> to vector<1x8xf32>
    %42 = vector.shape_cast %41 : vector<1x8xf32> to vector<1x8x1xf32>
    %43 = tpu.reciprocal %42 {approx = true} : vector<1x8x1xf32> -> vector<1x8x1xf32>
    %44 = vector.broadcast %43 : vector<1x8x1xf32> to vector<1x8x8xf32>
    %45 = arith.mulf %40, %44 : vector<1x8x8xf32>
    %46 = arith.truncf %45 : vector<1x8x8xf32> to vector<1x8x8xbf16>
    %47 = vector.extract_strided_slice %32 {offsets = [0, 0, 0], sizes = [1, 8, 4], strides = [1, 1, 1]} : vector<1x8x32xbf16> to vector<1x8x4xbf16>
    "tpu.trace_start"() <{level = 10 : i32, message = "bqk,bkd->bqd"}> : () -> ()
    %cst_16 = arith.constant dense<0.000000e+00> : vector<1x8x4xf32>
    %48 = tpu.matmul %46, %47, %cst_16 {dimension_numbers = #tpu.dot_dimension_numbers<[2], [1], [1], [2], [0, 0, 0, 1, 1, 2], [0], [0]>} : vector<1x8x8xbf16>, vector<1x8x4xbf16>, vector<1x8x4xf32> -> vector<1x8x4xf32>
    "tpu.trace_stop"() : () -> ()
    %49 = vector.shape_cast %48 : vector<1x8x4xf32> to vector<8x4xf32>
    %50 = arith.truncf %49 : vector<8x4xf32> to vector<8x4xbf16>
    %c0_17 = arith.constant 0 : index
    %c0_18 = arith.constant 0 : index
    %51 = vector.load %arg8[%c0_17, %c0_18] : memref<8x32xbf16, #tpu.memory_space<vmem>>, vector<8x4xbf16>
    tpu.vector_store %arg8[%c0_17, %c0_18], %50 {strides = array<i32>} : memref<8x32xbf16, #tpu.memory_space<vmem>>, vector<8x4xbf16>,
    %52 = vector.extract_strided_slice %18 {offsets = [0, 0, 4], sizes = [1, 8, 4], strides = [1, 1, 1]} : vector<1x8x32xbf16> to vector<1x8x4xbf16>
    %53 = vector.extract_strided_slice %24 {offsets = [0, 0, 4], sizes = [1, 8, 4], strides = [1, 1, 1]} : vector<1x8x32xbf16> to vector<1x8x4xbf16>
    "tpu.trace_start"() <{level = 10 : i32, message = "bqd,bkd->bqk"}> : () -> ()
    %cst_19 = arith.constant dense<0.000000e+00> : vector<1x8x8xf32>
    %54 = tpu.matmul %52, %53, %cst_19 {dimension_numbers = #tpu.dot_dimension_numbers<[2], [2], [1], [1], [0, 0, 0, 1, 1, 1], [0], [0]>} : vector<1x8x4xbf16>, vector<1x8x4xbf16>, vector<1x8x8xf32> -> vector<1x8x8xf32>
    "tpu.trace_stop"() : () -> ()
    %cst_20 = arith.constant dense<0xFF800000> : vector<1x8xf32>
    %55 = vector.multi_reduction <maximumf>, %54, %cst_20 [2] : vector<1x8x8xf32> to vector<1x8xf32>
    %56 = vector.shape_cast %55 : vector<1x8xf32> to vector<1x8x1xf32>
    %57 = vector.broadcast %56 : vector<1x8x1xf32> to vector<1x8x8xf32>
    %58 = arith.subf %54, %57 : vector<1x8x8xf32>
    %59 = math.exp %58 : vector<1x8x8xf32>
    %cst_21 = arith.constant dense<0.000000e+00> : vector<1x8xf32>
    %60 = vector.multi_reduction <add>, %59, %cst_21 [2] : vector<1x8x8xf32> to vector<1x8xf32>
    %61 = vector.shape_cast %60 : vector<1x8xf32> to vector<1x8x1xf32>
    %62 = tpu.reciprocal %61 {approx = true} : vector<1x8x1xf32> -> vector<1x8x1xf32>
    %63 = vector.broadcast %62 : vector<1x8x1xf32> to vector<1x8x8xf32>
    %64 = arith.mulf %59, %63 : vector<1x8x8xf32>
    %65 = arith.truncf %64 : vector<1x8x8xf32> to vector<1x8x8xbf16>
    %66 = vector.extract_strided_slice %32 {offsets = [0, 0, 4], sizes = [1, 8, 4], strides = [1, 1, 1]} : vector<1x8x32xbf16> to vector<1x8x4xbf16>
    "tpu.trace_start"() <{level = 10 : i32, message = "bqk,bkd->bqd"}> : () -> ()
    %cst_22 = arith.constant dense<0.000000e+00> : vector<1x8x4xf32>
    %67 = tpu.matmul %65, %66, %cst_22 {dimension_numbers = #tpu.dot_dimension_numbers<[2], [1], [1], [2], [0, 0, 0, 1, 1, 2], [0], [0]>} : vector<1x8x8xbf16>, vector<1x8x4xbf16>, vector<1x8x4xf32> -> vector<1x8x4xf32>
    "tpu.trace_stop"() : () -> ()
    %68 = vector.shape_cast %67 : vector<1x8x4xf32> to vector<8x4xf32>
    %69 = arith.truncf %68 : vector<8x4xf32> to vector<8x4xbf16>
    %c0_23 = arith.constant 0 : index
    %c4 = arith.constant 4 : index
    %70 = vector.load %arg8[%c0_23, %c4] : memref<8x32xbf16, #tpu.memory_space<vmem>>, vector<8x4xbf16>
    tpu.vector_store %arg8[%c0_23, %c4], %69 {strides = array<i32>} : memref<8x32xbf16, #tpu.memory_space<vmem>>, vector<8x4xbf16>,
    %71 = vector.extract_strided_slice %18 {offsets = [0, 0, 8], sizes = [1, 8, 4], strides = [1, 1, 1]} : vector<1x8x32xbf16> to vector<1x8x4xbf16>
    %72 = vector.extract_strided_slice %24 {offsets = [0, 0, 8], sizes = [1, 8, 4], strides = [1, 1, 1]} : vector<1x8x32xbf16> to vector<1x8x4xbf16>
    "tpu.trace_start"() <{level = 10 : i32, message = "bqd,bkd->bqk"}> : () -> ()
    %cst_24 = arith.constant dense<0.000000e+00> : vector<1x8x8xf32>
    %73 = tpu.matmul %71, %72, %cst_24 {dimension_numbers = #tpu.dot_dimension_numbers<[2], [2], [1], [1], [0, 0, 0, 1, 1, 1], [0], [0]>} : vector<1x8x4xbf16>, vector<1x8x4xbf16>, vector<1x8x8xf32> -> vector<1x8x8xf32>
    "tpu.trace_stop"() : () -> ()
    %cst_25 = arith.constant dense<0xFF800000> : vector<1x8xf32>
    %74 = vector.multi_reduction <maximumf>, %73, %cst_25 [2] : vector<1x8x8xf32> to vector<1x8xf32>
    %75 = vector.shape_cast %74 : vector<1x8xf32> to vector<1x8x1xf32>
    %76 = vector.broadcast %75 : vector<1x8x1xf32> to vector<1x8x8xf32>
    %77 = arith.subf %73, %76 : vector<1x8x8xf32>
    %78 = math.exp %77 : vector<1x8x8xf32>
    %cst_26 = arith.constant dense<0.000000e+00> : vector<1x8xf32>
    %79 = vector.multi_reduction <add>, %78, %cst_26 [2] : vector<1x8x8xf32> to vector<1x8xf32>
    %80 = vector.shape_cast %79 : vector<1x8xf32> to vector<1x8x1xf32>
    %81 = tpu.reciprocal %80 {approx = true} : vector<1x8x1xf32> -> vector<1x8x1xf32>
    %82 = vector.broadcast %81 : vector<1x8x1xf32> to vector<1x8x8xf32>
    %83 = arith.mulf %78, %82 : vector<1x8x8xf32>
    %84 = arith.truncf %83 : vector<1x8x8xf32> to vector<1x8x8xbf16>
    %85 = vector.extract_strided_slice %32 {offsets = [0, 0, 8], sizes = [1, 8, 4], strides = [1, 1, 1]} : vector<1x8x32xbf16> to vector<1x8x4xbf16>
    "tpu.trace_start"() <{level = 10 : i32, message = "bqk,bkd->bqd"}> : () -> ()
    %cst_27 = arith.constant dense<0.000000e+00> : vector<1x8x4xf32>
    %86 = tpu.matmul %84, %85, %cst_27 {dimension_numbers = #tpu.dot_dimension_numbers<[2], [1], [1], [2], [0, 0, 0, 1, 1, 2], [0], [0]>} : vector<1x8x8xbf16>, vector<1x8x4xbf16>, vector<1x8x4xf32> -> vector<1x8x4xf32>
    "tpu.trace_stop"() : () -> ()
    %87 = vector.shape_cast %86 : vector<1x8x4xf32> to vector<8x4xf32>
    %88 = arith.truncf %87 : vector<8x4xf32> to vector<8x4xbf16>
    %c0_28 = arith.constant 0 : index
    %c8 = arith.constant 8 : index
    %89 = vector.load %arg8[%c0_28, %c8] : memref<8x32xbf16, #tpu.memory_space<vmem>>, vector<8x4xbf16>
    tpu.vector_store %arg8[%c0_28, %c8], %88 {strides = array<i32>} : memref<8x32xbf16, #tpu.memory_space<vmem>>, vector<8x4xbf16>,
    %90 = vector.extract_strided_slice %18 {offsets = [0, 0, 12], sizes = [1, 8, 4], strides = [1, 1, 1]} : vector<1x8x32xbf16> to vector<1x8x4xbf16>
    %91 = vector.extract_strided_slice %24 {offsets = [0, 0, 12], sizes = [1, 8, 4], strides = [1, 1, 1]} : vector<1x8x32xbf16> to vector<1x8x4xbf16>
    "tpu.trace_start"() <{level = 10 : i32, message = "bqd,bkd->bqk"}> : () -> ()
    %cst_29 = arith.constant dense<0.000000e+00> : vector<1x8x8xf32>
    %92 = tpu.matmul %90, %91, %cst_29 {dimension_numbers = #tpu.dot_dimension_numbers<[2], [2], [1], [1], [0, 0, 0, 1, 1, 1], [0], [0]>} : vector<1x8x4xbf16>, vector<1x8x4xbf16>, vector<1x8x8xf32> -> vector<1x8x8xf32>
    "tpu.trace_stop"() : () -> ()
    %cst_30 = arith.constant dense<0xFF800000> : vector<1x8xf32>
    %93 = vector.multi_reduction <maximumf>, %92, %cst_30 [2] : vector<1x8x8xf32> to vector<1x8xf32>
    %94 = vector.shape_cast %93 : vector<1x8xf32> to vector<1x8x1xf32>
    %95 = vector.broadcast %94 : vector<1x8x1xf32> to vector<1x8x8xf32>
    %96 = arith.subf %92, %95 : vector<1x8x8xf32>
    %97 = math.exp %96 : vector<1x8x8xf32>
    %cst_31 = arith.constant dense<0.000000e+00> : vector<1x8xf32>
    %98 = vector.multi_reduction <add>, %97, %cst_31 [2] : vector<1x8x8xf32> to vector<1x8xf32>
    %99 = vector.shape_cast %98 : vector<1x8xf32> to vector<1x8x1xf32>
    %100 = tpu.reciprocal %99 {approx = true} : vector<1x8x1xf32> -> vector<1x8x1xf32>
    %101 = vector.broadcast %100 : vector<1x8x1xf32> to vector<1x8x8xf32>
    %102 = arith.mulf %97, %101 : vector<1x8x8xf32>
    %103 = arith.truncf %102 : vector<1x8x8xf32> to vector<1x8x8xbf16>
    %104 = vector.extract_strided_slice %32 {offsets = [0, 0, 12], sizes = [1, 8, 4], strides = [1, 1, 1]} : vector<1x8x32xbf16> to vector<1x8x4xbf16>
    "tpu.trace_start"() <{level = 10 : i32, message = "bqk,bkd->bqd"}> : () -> ()
    %cst_32 = arith.constant dense<0.000000e+00> : vector<1x8x4xf32>
    %105 = tpu.matmul %103, %104, %cst_32 {dimension_numbers = #tpu.dot_dimension_numbers<[2], [1], [1], [2], [0, 0, 0, 1, 1, 2], [0], [0]>} : vector<1x8x8xbf16>, vector<1x8x4xbf16>, vector<1x8x4xf32> -> vector<1x8x4xf32>
    "tpu.trace_stop"() : () -> ()
    %106 = vector.shape_cast %105 : vector<1x8x4xf32> to vector<8x4xf32>
    %107 = arith.truncf %106 : vector<8x4xf32> to vector<8x4xbf16>
    %c0_33 = arith.constant 0 : index
    %c12 = arith.constant 12 : index
    %108 = vector.load %arg8[%c0_33, %c12] : memref<8x32xbf16, #tpu.memory_space<vmem>>, vector<8x4xbf16>
    tpu.vector_store %arg8[%c0_33, %c12], %107 {strides = array<i32>} : memref<8x32xbf16, #tpu.memory_space<vmem>>, vector<8x4xbf16>,
    %109 = vector.extract_strided_slice %18 {offsets = [0, 0, 16], sizes = [1, 8, 4], strides = [1, 1, 1]} : vector<1x8x32xbf16> to vector<1x8x4xbf16>
    %110 = vector.extract_strided_slice %24 {offsets = [0, 0, 16], sizes = [1, 8, 4], strides = [1, 1, 1]} : vector<1x8x32xbf16> to vector<1x8x4xbf16>
    "tpu.trace_start"() <{level = 10 : i32, message = "bqd,bkd->bqk"}> : () -> ()
    %cst_34 = arith.constant dense<0.000000e+00> : vector<1x8x8xf32>
    %111 = tpu.matmul %109, %110, %cst_34 {dimension_numbers = #tpu.dot_dimension_numbers<[2], [2], [1], [1], [0, 0, 0, 1, 1, 1], [0], [0]>} : vector<1x8x4xbf16>, vector<1x8x4xbf16>, vector<1x8x8xf32> -> vector<1x8x8xf32>
    "tpu.trace_stop"() : () -> ()
    %cst_35 = arith.constant dense<0xFF800000> : vector<1x8xf32>
    %112 = vector.multi_reduction <maximumf>, %111, %cst_35 [2] : vector<1x8x8xf32> to vector<1x8xf32>
    %113 = vector.shape_cast %112 : vector<1x8xf32> to vector<1x8x1xf32>
    %114 = vector.broadcast %113 : vector<1x8x1xf32> to vector<1x8x8xf32>
    %115 = arith.subf %111, %114 : vector<1x8x8xf32>
    %116 = math.exp %115 : vector<1x8x8xf32>
    %cst_36 = arith.constant dense<0.000000e+00> : vector<1x8xf32>
    %117 = vector.multi_reduction <add>, %116, %cst_36 [2] : vector<1x8x8xf32> to vector<1x8xf32>
    %118 = vector.shape_cast %117 : vector<1x8xf32> to vector<1x8x1xf32>
    %119 = tpu.reciprocal %118 {approx = true} : vector<1x8x1xf32> -> vector<1x8x1xf32>
    %120 = vector.broadcast %119 : vector<1x8x1xf32> to vector<1x8x8xf32>
    %121 = arith.mulf %116, %120 : vector<1x8x8xf32>
    %122 = arith.truncf %121 : vector<1x8x8xf32> to vector<1x8x8xbf16>
    %123 = vector.extract_strided_slice %32 {offsets = [0, 0, 16], sizes = [1, 8, 4], strides = [1, 1, 1]} : vector<1x8x32xbf16> to vector<1x8x4xbf16>
    "tpu.trace_start"() <{level = 10 : i32, message = "bqk,bkd->bqd"}> : () -> ()
    %cst_37 = arith.constant dense<0.000000e+00> : vector<1x8x4xf32>
    %124 = tpu.matmul %122, %123, %cst_37 {dimension_numbers = #tpu.dot_dimension_numbers<[2], [1], [1], [2], [0, 0, 0, 1, 1, 2], [0], [0]>} : vector<1x8x8xbf16>, vector<1x8x4xbf16>, vector<1x8x4xf32> -> vector<1x8x4xf32>
    "tpu.trace_stop"() : () -> ()
    %125 = vector.shape_cast %124 : vector<1x8x4xf32> to vector<8x4xf32>
    %126 = arith.truncf %125 : vector<8x4xf32> to vector<8x4xbf16>
    %c0_38 = arith.constant 0 : index
    %c16 = arith.constant 16 : index
    %127 = vector.load %arg8[%c0_38, %c16] : memref<8x32xbf16, #tpu.memory_space<vmem>>, vector<8x4xbf16>
    tpu.vector_store %arg8[%c0_38, %c16], %126 {strides = array<i32>} : memref<8x32xbf16, #tpu.memory_space<vmem>>, vector<8x4xbf16>,
    %128 = vector.extract_strided_slice %18 {offsets = [0, 0, 20], sizes = [1, 8, 4], strides = [1, 1, 1]} : vector<1x8x32xbf16> to vector<1x8x4xbf16>
    %129 = vector.extract_strided_slice %24 {offsets = [0, 0, 20], sizes = [1, 8, 4], strides = [1, 1, 1]} : vector<1x8x32xbf16> to vector<1x8x4xbf16>
    "tpu.trace_start"() <{level = 10 : i32, message = "bqd,bkd->bqk"}> : () -> ()
    %cst_39 = arith.constant dense<0.000000e+00> : vector<1x8x8xf32>
    %130 = tpu.matmul %128, %129, %cst_39 {dimension_numbers = #tpu.dot_dimension_numbers<[2], [2], [1], [1], [0, 0, 0, 1, 1, 1], [0], [0]>} : vector<1x8x4xbf16>, vector<1x8x4xbf16>, vector<1x8x8xf32> -> vector<1x8x8xf32>
    "tpu.trace_stop"() : () -> ()
    %cst_40 = arith.constant dense<0xFF800000> : vector<1x8xf32>
    %131 = vector.multi_reduction <maximumf>, %130, %cst_40 [2] : vector<1x8x8xf32> to vector<1x8xf32>
    %132 = vector.shape_cast %131 : vector<1x8xf32> to vector<1x8x1xf32>
    %133 = vector.broadcast %132 : vector<1x8x1xf32> to vector<1x8x8xf32>
    %134 = arith.subf %130, %133 : vector<1x8x8xf32>
    %135 = math.exp %134 : vector<1x8x8xf32>
    %cst_41 = arith.constant dense<0.000000e+00> : vector<1x8xf32>
    %136 = vector.multi_reduction <add>, %135, %cst_41 [2] : vector<1x8x8xf32> to vector<1x8xf32>
    %137 = vector.shape_cast %136 : vector<1x8xf32> to vector<1x8x1xf32>
    %138 = tpu.reciprocal %137 {approx = true} : vector<1x8x1xf32> -> vector<1x8x1xf32>
    %139 = vector.broadcast %138 : vector<1x8x1xf32> to vector<1x8x8xf32>
    %140 = arith.mulf %135, %139 : vector<1x8x8xf32>
    %141 = arith.truncf %140 : vector<1x8x8xf32> to vector<1x8x8xbf16>
    %142 = vector.extract_strided_slice %32 {offsets = [0, 0, 20], sizes = [1, 8, 4], strides = [1, 1, 1]} : vector<1x8x32xbf16> to vector<1x8x4xbf16>
    "tpu.trace_start"() <{level = 10 : i32, message = "bqk,bkd->bqd"}> : () -> ()
    %cst_42 = arith.constant dense<0.000000e+00> : vector<1x8x4xf32>
    %143 = tpu.matmul %141, %142, %cst_42 {dimension_numbers = #tpu.dot_dimension_numbers<[2], [1], [1], [2], [0, 0, 0, 1, 1, 2], [0], [0]>} : vector<1x8x8xbf16>, vector<1x8x4xbf16>, vector<1x8x4xf32> -> vector<1x8x4xf32>
    "tpu.trace_stop"() : () -> ()
    %144 = vector.shape_cast %143 : vector<1x8x4xf32> to vector<8x4xf32>
    %145 = arith.truncf %144 : vector<8x4xf32> to vector<8x4xbf16>
    %c0_43 = arith.constant 0 : index
    %c20 = arith.constant 20 : index
    %146 = vector.load %arg8[%c0_43, %c20] : memref<8x32xbf16, #tpu.memory_space<vmem>>, vector<8x4xbf16>
    tpu.vector_store %arg8[%c0_43, %c20], %145 {strides = array<i32>} : memref<8x32xbf16, #tpu.memory_space<vmem>>, vector<8x4xbf16>,
    %147 = vector.extract_strided_slice %18 {offsets = [0, 0, 24], sizes = [1, 8, 4], strides = [1, 1, 1]} : vector<1x8x32xbf16> to vector<1x8x4xbf16>
    %148 = vector.extract_strided_slice %24 {offsets = [0, 0, 24], sizes = [1, 8, 4], strides = [1, 1, 1]} : vector<1x8x32xbf16> to vector<1x8x4xbf16>
    "tpu.trace_start"() <{level = 10 : i32, message = "bqd,bkd->bqk"}> : () -> ()
    %cst_44 = arith.constant dense<0.000000e+00> : vector<1x8x8xf32>
    %149 = tpu.matmul %147, %148, %cst_44 {dimension_numbers = #tpu.dot_dimension_numbers<[2], [2], [1], [1], [0, 0, 0, 1, 1, 1], [0], [0]>} : vector<1x8x4xbf16>, vector<1x8x4xbf16>, vector<1x8x8xf32> -> vector<1x8x8xf32>
    "tpu.trace_stop"() : () -> ()
    %cst_45 = arith.constant dense<0xFF800000> : vector<1x8xf32>
    %150 = vector.multi_reduction <maximumf>, %149, %cst_45 [2] : vector<1x8x8xf32> to vector<1x8xf32>
    %151 = vector.shape_cast %150 : vector<1x8xf32> to vector<1x8x1xf32>
    %152 = vector.broadcast %151 : vector<1x8x1xf32> to vector<1x8x8xf32>
    %153 = arith.subf %149, %152 : vector<1x8x8xf32>
    %154 = math.exp %153 : vector<1x8x8xf32>
    %cst_46 = arith.constant dense<0.000000e+00> : vector<1x8xf32>
    %155 = vector.multi_reduction <add>, %154, %cst_46 [2] : vector<1x8x8xf32> to vector<1x8xf32>
    %156 = vector.shape_cast %155 : vector<1x8xf32> to vector<1x8x1xf32>
    %157 = tpu.reciprocal %156 {approx = true} : vector<1x8x1xf32> -> vector<1x8x1xf32>
    %158 = vector.broadcast %157 : vector<1x8x1xf32> to vector<1x8x8xf32>
    %159 = arith.mulf %154, %158 : vector<1x8x8xf32>
    %160 = arith.truncf %159 : vector<1x8x8xf32> to vector<1x8x8xbf16>
    %161 = vector.extract_strided_slice %32 {offsets = [0, 0, 24], sizes = [1, 8, 4], strides = [1, 1, 1]} : vector<1x8x32xbf16> to vector<1x8x4xbf16>
    "tpu.trace_start"() <{level = 10 : i32, message = "bqk,bkd->bqd"}> : () -> ()
    %cst_47 = arith.constant dense<0.000000e+00> : vector<1x8x4xf32>
    %162 = tpu.matmul %160, %161, %cst_47 {dimension_numbers = #tpu.dot_dimension_numbers<[2], [1], [1], [2], [0, 0, 0, 1, 1, 2], [0], [0]>} : vector<1x8x8xbf16>, vector<1x8x4xbf16>, vector<1x8x4xf32> -> vector<1x8x4xf32>
    "tpu.trace_stop"() : () -> ()
    %163 = vector.shape_cast %162 : vector<1x8x4xf32> to vector<8x4xf32>
    %164 = arith.truncf %163 : vector<8x4xf32> to vector<8x4xbf16>
    %c0_48 = arith.constant 0 : index
    %c24 = arith.constant 24 : index
    %165 = vector.load %arg8[%c0_48, %c24] : memref<8x32xbf16, #tpu.memory_space<vmem>>, vector<8x4xbf16>
    tpu.vector_store %arg8[%c0_48, %c24], %164 {strides = array<i32>} : memref<8x32xbf16, #tpu.memory_space<vmem>>, vector<8x4xbf16>,
    %166 = vector.extract_strided_slice %18 {offsets = [0, 0, 28], sizes = [1, 8, 4], strides = [1, 1, 1]} : vector<1x8x32xbf16> to vector<1x8x4xbf16>
    %167 = vector.extract_strided_slice %24 {offsets = [0, 0, 28], sizes = [1, 8, 4], strides = [1, 1, 1]} : vector<1x8x32xbf16> to vector<1x8x4xbf16>
    "tpu.trace_start"() <{level = 10 : i32, message = "bqd,bkd->bqk"}> : () -> ()
    %cst_49 = arith.constant dense<0.000000e+00> : vector<1x8x8xf32>
    %168 = tpu.matmul %166, %167, %cst_49 {dimension_numbers = #tpu.dot_dimension_numbers<[2], [2], [1], [1], [0, 0, 0, 1, 1, 1], [0], [0]>} : vector<1x8x4xbf16>, vector<1x8x4xbf16>, vector<1x8x8xf32> -> vector<1x8x8xf32>
    "tpu.trace_stop"() : () -> ()
    %cst_50 = arith.constant dense<0xFF800000> : vector<1x8xf32>
    %169 = vector.multi_reduction <maximumf>, %168, %cst_50 [2] : vector<1x8x8xf32> to vector<1x8xf32>
    %170 = vector.shape_cast %169 : vector<1x8xf32> to vector<1x8x1xf32>
    %171 = vector.broadcast %170 : vector<1x8x1xf32> to vector<1x8x8xf32>
    %172 = arith.subf %168, %171 : vector<1x8x8xf32>
    %173 = math.exp %172 : vector<1x8x8xf32>
    %cst_51 = arith.constant dense<0.000000e+00> : vector<1x8xf32>
    %174 = vector.multi_reduction <add>, %173, %cst_51 [2] : vector<1x8x8xf32> to vector<1x8xf32>
    %175 = vector.shape_cast %174 : vector<1x8xf32> to vector<1x8x1xf32>
    %176 = tpu.reciprocal %175 {approx = true} : vector<1x8x1xf32> -> vector<1x8x1xf32>
    %177 = vector.broadcast %176 : vector<1x8x1xf32> to vector<1x8x8xf32>
    %178 = arith.mulf %173, %177 : vector<1x8x8xf32>
    %179 = arith.truncf %178 : vector<1x8x8xf32> to vector<1x8x8xbf16>
    %180 = vector.extract_strided_slice %32 {offsets = [0, 0, 28], sizes = [1, 8, 4], strides = [1, 1, 1]} : vector<1x8x32xbf16> to vector<1x8x4xbf16>
    "tpu.trace_start"() <{level = 10 : i32, message = "bqk,bkd->bqd"}> : () -> ()
    %cst_52 = arith.constant dense<0.000000e+00> : vector<1x8x4xf32>
    %181 = tpu.matmul %179, %180, %cst_52 {dimension_numbers = #tpu.dot_dimension_numbers<[2], [1], [1], [2], [0, 0, 0, 1, 1, 2], [0], [0]>} : vector<1x8x8xbf16>, vector<1x8x4xbf16>, vector<1x8x4xf32> -> vector<1x8x4xf32>
    "tpu.trace_stop"() : () -> ()
    %182 = vector.shape_cast %181 : vector<1x8x4xf32> to vector<8x4xf32>
    %183 = arith.truncf %182 : vector<8x4xf32> to vector<8x4xbf16>
    %c0_53 = arith.constant 0 : index
    %c28 = arith.constant 28 : index
    %184 = vector.load %arg8[%c0_53, %c28] : memref<8x32xbf16, #tpu.memory_space<vmem>>, vector<8x4xbf16>
    tpu.vector_store %arg8[%c0_53, %c28], %183 {strides = array<i32>} : memref<8x32xbf16, #tpu.memory_space<vmem>>, vector<8x4xbf16>,
    %185 = vector.broadcast %4 : vector<1x32xf32> to vector<8x32xf32>
    %186 = arith.addf %9, %185 : vector<8x32xf32>
    %c0_54 = arith.constant 0 : index
    %c0_55 = arith.constant 0 : index
    %187 = vector.load %arg8[%c0_54, %c0_55] : memref<8x32xbf16, #tpu.memory_space<vmem>>, vector<8x32xbf16>
    %c0_56 = arith.constant 0 : index
    %c0_57 = arith.constant 0 : index
    %188 = vector.load %arg5[%c0_56, %c0_57] : memref<32x32xbf16, #tpu.memory_space<vmem>>, vector<32x32xbf16>
    %cst_58 = arith.constant dense<0.000000e+00> : vector<8x32xf32>
    %189 = tpu.matmul %187, %188, %cst_58 {dimension_numbers = #tpu.dot_dimension_numbers<[1], [0], [0], [1], [0, 0, 1, 1], [], []>} : vector<8x32xbf16>, vector<32x32xbf16>, vector<8x32xf32> -> vector<8x32xf32>
    %190 = arith.addf %186, %189 : vector<8x32xf32>
    %cst_59 = arith.constant dense<0.000000e+00> : vector<8xf32>
    %191 = vector.multi_reduction <add>, %190, %cst_59 [1] : vector<8x32xf32> to vector<8xf32>
    %192 = vector.shape_cast %191 : vector<8xf32> to vector<8x1xf32>
    %cst_60 = arith.constant 3.200000e+01 : f32
    %193 = vector.broadcast %cst_60 : f32 to vector<8x1xf32>
    %194 = arith.divf %192, %193 : vector<8x1xf32>
    %195 = vector.broadcast %194 : vector<8x1xf32> to vector<8x32xf32>
    %196 = arith.subf %190, %195 : vector<8x32xf32>
    %197 = arith.mulf %196, %196 : vector<8x32xf32>
    %cst_61 = arith.constant dense<0.000000e+00> : vector<8xf32>
    %198 = vector.multi_reduction <add>, %197, %cst_61 [1] : vector<8x32xf32> to vector<8xf32>
    %199 = vector.shape_cast %198 : vector<8xf32> to vector<8x1xf32>
    %cst_62 = arith.constant 3.200000e+01 : f32
    %200 = vector.broadcast %cst_62 : f32 to vector<8x1xf32>
    %201 = arith.divf %199, %200 : vector<8x1xf32>
    %cst_63 = arith.constant 9.99999974E-6 : f32
    %202 = vector.broadcast %cst_63 : f32 to vector<8x1xf32>
    %203 = arith.addf %201, %202 : vector<8x1xf32>
    %204 = math.rsqrt %203 : vector<8x1xf32>
    %205 = vector.broadcast %204 : vector<8x1xf32> to vector<8x32xf32>
    %206 = arith.mulf %196, %205 : vector<8x32xf32>
    %207 = vector.broadcast %5 : vector<1x32xf32> to vector<8x32xf32>
    %208 = arith.mulf %206, %207 : vector<8x32xf32>
    %209 = vector.broadcast %6 : vector<1x32xf32> to vector<8x32xf32>
    %210 = arith.addf %208, %209 : vector<8x32xf32>
    %211 = vector.shape_cast %210 : vector<8x32xf32> to vector<1x8x32xf32>
    %c0_64 = arith.constant 0 : index
    %c0_65 = arith.constant 0 : index
    %c0_66 = arith.constant 0 : index
    %212 = vector.load %arg7[%c0_64, %c0_65, %c0_66] : memref<1x8x32xf32, #tpu.memory_space<vmem>>, vector<1x8x32xf32>
    tpu.vector_store %arg7[%c0_64, %c0_65, %c0_66], %211 {strides = array<i32>} : memref<1x8x32xf32, #tpu.memory_space<vmem>>, vector<1x8x32xf32>,
    return
  }
  func.func @transform_0(%arg0: i32) -> (i32, i32, i32) {
    %c0_i32 = arith.constant 0 : i32
    %c0_i32_0 = arith.constant 0 : i32
    %c0_i32_1 = arith.constant 0 : i32
    return %arg0, %c0_i32, %c0_i32_0 : i32, i32, i32
  }
  func.func @transform_1(%arg0: i32) -> (i32, i32) {
    %c0_i32 = arith.constant 0 : i32
    %c0_i32_0 = arith.constant 0 : i32
    %c0_i32_1 = arith.constant 0 : i32
    return %c0_i32, %c0_i32_0 : i32, i32
  }
  func.func @transform_2(%arg0: i32) -> (i32, i32) {
    %c0_i32 = arith.constant 0 : i32
    %c0_i32_0 = arith.constant 0 : i32
    %c0_i32_1 = arith.constant 0 : i32
    return %c0_i32, %c0_i32_0 : i32, i32
  }
  func.func @transform_3(%arg0: i32) -> (i32, i32) {
    %c0_i32 = arith.constant 0 : i32
    %c0_i32_0 = arith.constant 0 : i32
    %c0_i32_1 = arith.constant 0 : i32
    return %c0_i32, %c0_i32_0 : i32, i32
  }
  func.func @transform_4(%arg0: i32) -> (i32, i32) {
    %c0_i32 = arith.constant 0 : i32
    %c0_i32_0 = arith.constant 0 : i32
    %c0_i32_1 = arith.constant 0 : i32
    return %c0_i32, %c0_i32_0 : i32, i32
  }
  func.func @transform_5(%arg0: i32) -> (i32, i32) {
    %c0_i32 = arith.constant 0 : i32
    %c0_i32_0 = arith.constant 0 : i32
    %c0_i32_1 = arith.constant 0 : i32
    return %c0_i32, %c0_i32_0 : i32, i32
  }
  func.func @transform_6(%arg0: i32) -> (i32, i32, i32) {
    %c0_i32 = arith.constant 0 : i32
    %c0_i32_0 = arith.constant 0 : i32
    %c0_i32_1 = arith.constant 0 : i32
    return %arg0, %c0_i32, %c0_i32_0 : i32, i32, i32
  }
}

</mosaic_0001>

<bundles_post_ra>
// kernel: tpu_custom_call.1
= control target key start
LH: loop header
LB: loop body
LE: loop exit
PB: predicated region body
PF: predicated region fallthrough
CT: control target
= control target key end

     0   :  { %11 = vsyncpa [#allocation4], 0  ;;  %s2839_s0 = inlined_call_operand.hbm [shape: f32[2,8,32], index: 0, kind: input, shape index: {}]   ;;  %s2840_s1 = inlined_call_operand.hbm [shape: bf16[32,32], index: 1, kind: input, shape index: {}]   ;;  %s2841_s2 = inlined_call_operand.hbm [shape: bf16[32,32], index: 2, kind: input, shape index: {}]   ;;  %s2842_s3 = inlined_call_operand.hbm [shape: bf16[32,32], index: 3, kind: input, shape index: {}]   ;;  %s2843_s4 = inlined_call_operand.hbm [shape: bf16[32,32], index: 4, kind: input, shape index: {}]   ;;  %s2844_s5 = inlined_call_operand.vmem [shape: f32[8,32], index: 5, kind: input, shape index: {}]   ;;  %s2845_s6 = inlined_call_operand.hbm [shape: f32[2,8,32], index: 6, kind: output, shape index: {}]  }
   0x1   :  { %13 = vsyncpa [#allocation4 + $0x1], 0 }
   0x2   :  { %14 = vsyncpa [#allocation7], 0 }
   0x3   :  { %15 = vsyncpa [#allocation10], 0 }
   0x4   :  { %16 = vsyncpa [#allocation5], 0 }
   0x5   :  { %18 = vsyncpa [#allocation5 + $0x1], 0  ;;  %s2339_s21 = smov 0   ;;  %s2341_s22 = smov 0  }
   0x6   :  { %s2343_s23 = smov 0   ;;  %s2345_s24 = smov 0  }
   0x7 LB: > { %s2280_s25 = smov [#allocation6]   ;;  %s2360_s27 = sadd.s32 4294967295, %s2278_s24   ;;  %s2278_s24 = sphi %s2345_s24, %s2869_s24   ;;  %s2274_s23 = sphi %s2343_s23, %s2868_s23   ;;  %s2270_s22 = sphi %s2341_s22, %s2867_s22   ;;  %s2266_s21 = sphi %s2339_s21, %s2866_s21  }
   0x8   : > { %s198_s26 = sshll.u32 %s2280_s25, 4  ;;  %p1682_p0 = scmp.ge.s32.totalorder %s2278_s24, 1  ;;  %s2365_s26 = int_to_ptr.vmem [resolvable:$true] %s198_s26 }
   0x9   : > { %p2846_p1 = scmp.eq.s32.totalorder %s2360_s27, 0  ;;  %p186_p2 = scmp.lt.s32.totalorder %s2278_s24, 3 }
   0xa   : > { %s2281_s29 = smov [#allocation9]   ;;  %s2282_s8 = smov [#allocation8]  }
   0xb   : > { %p2367_p3 = pnand %p1682_p0, %p186_p2  ;;  %s224_s30 = sshll.u32 %s2281_s29, 4  ;;  %s2380_s30 = int_to_ptr.vmem [resolvable:$true] %s224_s30 }
   0xc   : > { %s211_s9 = sshll.u32 %s2282_s8, 4  ;;  %s2062_s12 = scalar_lea.hbm %s2840_s1, 256  ;;  %s2382_s9 = int_to_ptr.vmem [resolvable:$true] %s211_s9 }
   0xd   : > { %s2849_s28 = scalar_select %p2367_p3, 1, 0 }
   0xe   : > { %p1935_p5 = pneg %p2367_p3  ;;  %p2063_p7 = scmp.ne.s32.totalorder %s2840_s1, %s2062_s12 }
   0xf   : > { %p2069_p11 = scmp.lt.u32.totalorder %s2062_s12, %s2840_s1 }
  0x10   : > { %p2376_p6 = pnand %p1935_p5, %p2846_p1 }
  0x12   : > { %p2392_p8 = pneg %p2376_p6 }
  0x14   : > { %p2065_p9 = pnand %p2392_p8, %p2063_p7 }
  0x16   : > { %p2066_p10 = pneg %p2065_p9 }
  0x18   : > { %p2071_p12 = pnand %p2069_p11, %p2066_p10 }
  0x1a   : > { %2074 = shalt.err (!%p2071_p12)
}
  0x1b   : > { %s2075_s18 = scalar_lea.vmem %s2365_s26, 256  ;;  %p2083_p5 = scmp.lt.s32.totalorder %s2365_s26, %s2365_s26 }
  0x1c   : > { %p2076_p13 = scmp.ne.s32.totalorder %s2365_s26, %s2075_s18  ;;  %p2084_p4 = scmp.lt.s32.totalorder %s2075_s18, %s2075_s18 }
  0x1e   : > { %p2078_p0 = pnand %p2076_p13, %p2392_p8  ;;  %p2085_p7 = por %p2084_p4, %p2083_p5 }
  0x20   : > { %p2079_p2 = pneg %p2078_p0 }
  0x22   : > { %p2086_p9 = pnand %p2085_p7, %p2079_p2 }
  0x24   : > { %2089 = shalt.err (!%p2086_p9)
}
  0x25   : > { %s2283_s19 = smov 64   ;;  %s2284_s20 = smov 4  }
  0x26   : > { %1938 = dma.hbm_to_vmem [thread:$0]  (!%p2376_p6), %s2840_s1, 256, %s2365_s26, [#allocation7], %s2283_s19, %s2283_s19, %s2284_s20  }
  0x27   : > { %s2090_s11 = scalar_lea.hbm %s2842_s3, 256 }
  0x28   : > { %p2091_p4 = scmp.ne.s32.totalorder %s2842_s3, %s2090_s11  ;;  %p2097_p12 = scmp.lt.u32.totalorder %s2090_s11, %s2842_s3 }
  0x2a   : > { %p2093_p10 = pnand %p2091_p4, %p2392_p8 }
  0x2c   : > { %p2094_p11 = pneg %p2093_p10 }
  0x2e   : > { %p2099_p13 = pnand %p2097_p12, %p2094_p11 }
  0x30   : > { %2102 = shalt.err (!%p2099_p13)
}
  0x31   : > { %s2103_s26 = scalar_lea.vmem %s2380_s30, 256  ;;  %p2111_p7 = scmp.lt.s32.totalorder %s2380_s30, %s2380_s30 }
  0x32   : > { %p2104_p0 = scmp.ne.s32.totalorder %s2380_s30, %s2103_s26  ;;  %p2112_p9 = scmp.lt.s32.totalorder %s2103_s26, %s2103_s26 }
  0x34   : > { %p2106_p2 = pnand %p2104_p0, %p2392_p8  ;;  %p2113_p4 = por %p2112_p9, %p2111_p7 }
  0x36   : > { %p2107_p5 = pneg %p2106_p2 }
  0x38   : > { %p2114_p10 = pnand %p2113_p4, %p2107_p5 }
  0x3a   : > { %2117 = shalt.err (!%p2114_p10)
}
  0x3b   : > { %1944 = dma.hbm_to_vmem [thread:$0]  (!%p2376_p6), %s2842_s3, 256, %s2380_s30, [#allocation10], %s2283_s19, %s2283_s19, %s2284_s20  }
  0x3c   : > { %s2118_s8 = scalar_lea.hbm %s2841_s2, 256 }
  0x3d   : > { %p2119_p11 = scmp.ne.s32.totalorder %s2841_s2, %s2118_s8  ;;  %p2125_p0 = scmp.lt.u32.totalorder %s2118_s8, %s2841_s2 }
  0x3f   : > { %p2121_p12 = pnand %p2119_p11, %p2392_p8 }
  0x41   : > { %p2122_p13 = pneg %p2121_p12 }
  0x43   : > { %p2127_p2 = pnand %p2125_p0, %p2122_p13 }
  0x45   : > { %2130 = shalt.err (!%p2127_p2)
}
  0x46   : > { %s2131_s30 = scalar_lea.vmem %s2382_s9, 256  ;;  %p2139_p4 = scmp.lt.s32.totalorder %s2382_s9, %s2382_s9 }
  0x47   : > { %p2132_p5 = scmp.ne.s32.totalorder %s2382_s9, %s2131_s30  ;;  %p2140_p10 = scmp.lt.s32.totalorder %s2131_s30, %s2131_s30 }
  0x49   : > { %p2134_p7 = pnand %p2132_p5, %p2392_p8  ;;  %p2141_p11 = por %p2140_p10, %p2139_p4 }
  0x4b   : > { %p2135_p9 = pneg %p2134_p7 }
  0x4d   : > { %p2142_p12 = pnand %p2141_p11, %p2135_p9 }
  0x4f   : > { %2145 = shalt.err (!%p2142_p12)
}
  0x50   : > { %1941 = dma.hbm_to_vmem [thread:$0]  (!%p2376_p6), %s2841_s2, 256, %s2382_s9, [#allocation7], %s2283_s19, %s2283_s19, %s2284_s20  }
  0x51   : > { %s2285_s26 = smov [#allocation11]   ;;  %s2146_s29 = scalar_lea.hbm %s2843_s4, 256 }
  0x52   : > { %s237_s17 = sshll.u32 %s2285_s26, 4  ;;  %p2147_p13 = scmp.ne.s32.totalorder %s2843_s4, %s2146_s29  ;;  %s238_s17 = int_to_ptr.vmem [resolvable:$true] %s237_s17 }
  0x53   : > { %p2153_p5 = scmp.lt.u32.totalorder %s2146_s29, %s2843_s4 }
  0x54   : > { %p2149_p0 = pnand %p2147_p13, %p2392_p8 }
  0x56   : > { %p2150_p2 = pneg %p2149_p0 }
  0x58   : > { %p2155_p7 = pnand %p2153_p5, %p2150_p2 }
  0x5a   : > { %2158 = shalt.err (!%p2155_p7)
}
  0x5b   : > { %s2159_s9 = scalar_lea.vmem %s238_s17, 256  ;;  %p2167_p11 = scmp.lt.s32.totalorder %s238_s17, %s238_s17 }
  0x5c   : > { %p2160_p9 = scmp.ne.s32.totalorder %s238_s17, %s2159_s9  ;;  %p2168_p12 = scmp.lt.s32.totalorder %s2159_s9, %s2159_s9 }
  0x5e   : > { %p2162_p4 = pnand %p2160_p9, %p2392_p8  ;;  %p2169_p1 = por %p2168_p12, %p2167_p11 }
  0x60   : > { %p2163_p10 = pneg %p2162_p4 }
  0x62   : > { %p2170_p3 = pnand %p2169_p1, %p2163_p10 }
  0x64   : > { %2173 = shalt.err (!%p2170_p3)
}
  0x65   : > { %1947 = dma.hbm_to_vmem [thread:$0]  (!%p2376_p6), %s2843_s4, 256, %s238_s17, [#allocation10], %s2283_s19, %s2283_s19, %s2284_s20  }
  0x66   : > { %s1681_s7 = sadd.s32 4294967294, %s2278_s24   ;;  %s2491_s15 = sadd.s32 1, %s2278_s24  }
  0x67   : > { %s28_s14 = ssub.s32 %s2278_s24, %s2491_s15  ;;  %s31_s16 = sadd.s32 1, %s2274_s23 }
  0x68   : > { %p29_p1 = scmp.eq.s32.totalorder %s28_s14, 0  ;;  %p38_p3 = scmp.ne.s32.totalorder %s2274_s23, %s2270_s22 }
  0x69   : > { %p39_p8 = scmp.eq.s32.totalorder %s2278_s24, 0  ;;  %p44_p13 = scmp.ne.s32.totalorder %s2270_s22, %s2266_s21 }
  0x6a   : > { %s2502_s26 = scalar_select %p29_p1, %s2274_s23, %s31_s16  }
  0x6b   : > { %p2504_p0 = por %p39_p8, %p38_p3  ;;  %p2853_p2 = scmp.eq.s32.totalorder %s2360_s27, 0 }
  0x6c   : > { %p173_p5 = scmp.eq.s32.totalorder %s2360_s27, 1  ;;  %p179_p7 = scmp.eq.s32.totalorder %s1681_s7, 1 }
  0x6d   : > { %p2510_p6 = por %p2853_p2, %p44_p13  ;;  %p1960_p9 = scmp.lt.s32.totalorder %s2278_s24, 2 }
  0x6e   : > { %s254_s20 = sand.u32 1, %s2274_s23   ;;  %p2517_p4 = por %p173_p5, %p38_p3 }
  0x6f   : > { %p2521_p10 = por %p179_p7, %p44_p13  ;;  %s1688_s29 = sshll.u32 %s254_s20, 3 }
  0x70   : > { %s2855_s17 = scalar_select %p2517_p4, 1, 0 }
  0x71   : > { %s2856_s25 = scalar_select %p2521_p10, 1, 0 }
  0x72   : > { %s1689_s8 = sshll.u32 %s2278_s24, 7  ;;  %s258_s9 = scalar_lea.vmem [#allocation3], %s1688_s29 }
  0x73   : > { %s2529_s12 = scalar_lea.hbm %s2839_s0, %s1689_s8  ;;  %s265_s13 = sshll.u32 %s258_s9, 4  ;;  %s2531_s13 = int_to_ptr.vmem [resolvable:$true] %s265_s13 }
  0x74   : > { %p2535_p11 = pnand %p1960_p9, %p2504_p0  ;;  %s255_s7 = scalar_lea.sflag [#allocation4], %s254_s20 }
  0x75   : > { %s2174_s14 = scalar_lea.hbm %s2529_s12, 128  ;;  %s2179_s8 = scalar_lea.hbm %s2839_s0, 256 }
  0x76   : > { %p2175_p12 = scmp.ne.s32.totalorder %s2529_s12, %s2174_s14  ;;  %p2176_p1 = pneg %p2535_p11 }
  0x77   : > { %p2180_p13 = scmp.lt.u32.totalorder %s2529_s12, %s2839_s0  ;;  %p2181_p0 = scmp.lt.u32.totalorder %s2179_s8, %s2174_s14 }
  0x78   : > { %p2177_p3 = pnand %p2176_p1, %p2175_p12  ;;  %p2183_p5 = scmp.lt.u32.totalorder %s2174_s14, %s2529_s12 }
  0x79   : > { %p2182_p2 = por %p2181_p0, %p2180_p13 }
  0x7a   : > { %p2178_p8 = pneg %p2177_p3 }
  0x7b   : > { %p2184_p7 = por %p2183_p5, %p2182_p2 }
  0x7d   : > { %p2185_p9 = pnand %p2184_p7, %p2178_p8 }
  0x7f   : > { %2188 = shalt.err (!%p2185_p9)
}
  0x80   : > { %s2189_s20 = scalar_lea.vmem %s2531_s13, 128  ;;  %s2286_s11 = smov [#allocation3]  }
  0x81   : > { %p2190_p12 = scmp.ne.s32.totalorder %s2531_s13, %s2189_s20  ;;  %s2194_s9 = sshll.u32 %s2286_s11, 4  ;;  %s2195_s9 = int_to_ptr.vmem [resolvable:$false] %s2194_s9 }
  0x82   : > { %s2196_s16 = scalar_lea.vmem %s2195_s9, 256  ;;  %p2197_p4 = scmp.lt.s32.totalorder %s2531_s13, %s2195_s9 }
  0x83   : > { %p2192_p3 = pnand %p2190_p12, %p2176_p1  ;;  %p2198_p13 = scmp.lt.s32.totalorder %s2196_s16, %s2189_s20 }
  0x85   : > { %p2193_p10 = pneg %p2192_p3  ;;  %p2199_p0 = por %p2198_p13, %p2197_p4 }
  0x87   : > { %p2200_p2 = pnand %p2199_p0, %p2193_p10 }
  0x89   : > { %2203 = shalt.err (!%p2200_p2)
}
  0x8a   : > { %1951 = dma.hbm_to_vmem [thread:$0]  (!%p2535_p11), %s2529_s12, 128, %s2531_s13, %s255_s7  }
  0x8b   : > { %p2858_p8 = scmp.ne.s32.totalorder %s2849_s28, 0 }
  0x8c   : > { %s2567_s14 = sand.u32 (!%p2858_p8), 1, %s2270_s22  }
  0x8d   : > { %274 = sbr.rel (%p2858_p8) target bundleno = 1995 (0x7cb), region = 44  ;;  %s1691_s29 = sshll.u32 (!%p2858_p8), %s2567_s14, 3 }
  0x8e   : > { %s277_s8 = scalar_lea.sflag (!%p2858_p8), [#allocation4], %s2567_s14  ;;  %s280_s18 = scalar_lea.vmem (!%p2858_p8), [#allocation3], %s1691_s29 }
  0x94   : > { %2249 = dma.done.wait (%p2510_p6), %s277_s8, 128  }
  0x95   : > { %2251 = vsyncadd (%p2510_p6), %s277_s8, 4294967168  ;;  %p2859_p4 = scmp.eq.s32.totalorder %s2360_s27, 0 }
  0x97   : > { %2253 = dma.done.wait (%p2859_p4), [#allocation7], 512   ;;  %p2860_p10 = pmov %p2859_p4 }
  0x98   : > { %p2861_p11 = pmov %p2859_p4 }
  0x99   : > { %2255 = vsyncadd (%p2860_p10), [#allocation7], 4294966784 }
  0x9a   : > { %2257 = dma.done.wait (%p2861_p11), [#allocation10], 512   ;;  %p2862_p1 = pmov %p2859_p4 }
  0x9b   : > { %v2287_v0 = vmov 0.0   ;;  %vm2288_vm0 = vmmov 0   ;;  %v2020_v1 = vld [vmem:[#allocation8] sm:$0xff]   ;;  %v2021_v2 = vld [vmem:[#allocation6] sm:$0xff]   ;;  %v2022_v3 = vld [vmem:[#allocation8 + $0x8] sm:$0xff]   ;;  %vm349_vm1 = vcmask 261120   ;;  %v333_v7 = vlaneseq }
  0x9c   : > { %2259 = vsyncadd (%p2862_p1), [#allocation10], 4294966784  ;;  %1795 = vmatprep.subr.bf16.mxu1 %v2287_v0  ;;  %1787 = vmatprep.subr.bf16.mxu0 %v2287_v0  ;;  %v2023_v4 = vld [vmem:[#allocation6 + $0x8] sm:$0xff]   ;;  %v2593_v5 = vld [vmem:[%s280_s18] sm:$0xff]  ;;  %vm522_vm2 = vcmask 31744   ;;  %s2289_s12 = smov 120  }
  0x9d   : > { %1799 = vmatprep.mubr.msk.bf16.mxu1 %vm2288_vm0, %v2287_v0  ;;  %1791 = vmatprep.mubr.msk.bf16.mxu0 %vm2288_vm0, %v2287_v0  ;;  %v328_v6 = vpack.c.bf16 %v2593_v5, %v2593_v5  ;;  %v2605_v8 = vshrl.u32 %v333_v7, 7  ;;  %v2611_v10 = vld [vmem:[%s2844_s5] sm:$0xff]  ;;  %s2290_s13 = smov 124   ;;  %s2291_s30 = smov 116   ;;  %v2024_v28 = vld [vmem:[#allocation9] sm:$0xff]   ;;  %vm569_vm3 = vcmask 64512  }
  0x9e   : > { %1796 = vmatpush3.bf16.msra.mxu1 %v2020_v1  ;;  %1788 = vmatpush3.bf16.msra.mxu0 %v2021_v2  ;;  %s2292_s7 = smov 112   ;;  %s2293_s10 = smov 108   ;;  %v2025_v29 = vld [vmem:[#allocation9 + $0x8] sm:$0xff]   ;;  %vm585_vm4 = vcmask 1043456   ;;  %vm630_vm5 = vcmask 27648   ;;  %vm752_vm6 = vcmask 60448  }
  0x9f   : > { %1797 = vmatprep.subr.bf16.mxu1 %v2287_v0  ;;  %1789 = vmatprep.subr.bf16.mxu0 %v2287_v0  ;;  %v401_v9 = vsub.s32 1, %v2605_v8  ;;  %v335_v11 = vsub.s32 0, %v2605_v8  ;;  %s2294_s20 = smov 104   ;;  %s2295_s11 = smov 100   ;;  %v462_v56 = vsub.s32 2, %v2605_v8  ;;  %v518_v57 = vsub.s32 6, %v2605_v8 }
  0xa0   : > { %s2296_s9 = smov 4   ;;  %s2297_s16 = smov 8   ;;  %vm871_vm7 = vcmask 93248   ;;  %vm990_vm8 = vcmask 126048   ;;  %vm1109_vm9 = vcmask 158848   ;;  %vm1228_vm10 = vcmask 191648  }
  0xa1   : > { %v402_v12 = vrot.slane %v2611_v10, %v401_v9  ;;  %v336_v13 = vrot.slane %v2611_v10, %v335_v11  ;;  %v463_v58 = vrot.slane %v2611_v10, %v462_v56  ;;  %v519_v59 = vrot.slane %v2611_v10, %v518_v57  ;;  %s2298_s8 = smov 12   ;;  %s2299_s18 = smov 16  }
  0xa2   : > { %1798 = vmatpush3.bf16.msra.mxu1 %v2022_v3  ;;  %1790 = vmatpush3.bf16.msra.mxu0 %v2023_v4  ;;  %s2300_s28 = smov 20   ;;  %s2301_s19 = smov 24   ;;  %vm1347_vm11 = vcmask 224448   ;;  %vm1466_vm12 = vcmask 257248  }
  0xa3   : > { %1811 = vmatprep.subr.bf16.mxu1 %v2287_v0  ;;  %1803 = vmatprep.subr.bf16.mxu0 %v2287_v0  ;;  %p2863_p5 = scmp.ne.s32.totalorder %s2855_s17, 0 }
  0xa5   : > { %1800 = vmatmul.mubr.msk.bf16.vlgmr.msra.gmra.mrb[0].mxu1 %vm349_vm1, %v328_v6  ;;  %1792 = vmatmul.mubr.msk.bf16.vlgmr.msra.gmra.mrb[0].mxu0 %vm349_vm1, %v328_v6 }
  0xa6   : > { %1813 = vmatprep.mubr.msk.bf16.mxu1 %vm2288_vm0, %v2287_v0  ;;  %1807 = vmatprep.mubr.msk.bf16.mxu0 %vm2288_vm0, %v2287_v0 }
  0xa7   : > { %1804 = vmatpush3.bf16.msra.mxu0 %v2024_v28 }
  0xa8   : > { %1805 = vmatprep.subr.bf16.mxu0 %v2287_v0 }
  0xab   : > { %1806 = vmatpush3.bf16.msra.mxu0 %v2025_v29 }
  0xac   : > { %1817 = vmatprep.subr.bf16.mxu0 %v2287_v0 }
  0xae   : > { %1808 = vmatmul.mubr.msk.bf16.vlgmr.msra.gmra.mrb[4].mxu0 %vm349_vm1, %v328_v6 }
  0xaf   : > { %1819 = vmatprep.mubr.msk.bf16.mxu0 %vm2288_vm0, %v2287_v0 }
 0x178   : > { %v449_v14 = vpop.f32.mrb[0].mxu1  ;;  %v387_v17 = vpop.f32.mrb[0].mxu0 }
 0x179   : > { %v450_v15 = vadd.f32 %v449_v14, %v402_v12  ;;  %v1801_v16 = vpop.f32.mrb[1].mxu1  ;;  %v388_v18 = vadd.f32 %v387_v17, %v336_v13  ;;  %v1793_v20 = vpop.f32.mrb[1].mxu0 }
 0x17a   : > { %v452_v19 = vpop.f32.mrb[2].mxu1  ;;  %v390_v23 = vpop.f32.mrb[2].mxu0 }
 0x17b   : > { %v455_v21 = vpack.c.bf16 %v450_v15, %v450_v15  ;;  %v1802_v22 = vpop.f32.mrb[3].mxu1  ;;  %v393_v24 = vmul.f32 0.5, %v388_v18  ;;  %v1794_v25 = vpop.f32.mrb[3].mxu0 }
 0x17d   : > { %756 = vrot.lane.b32.xlu1 %v455_v21, %s2289_s12  ;;  %636 = vrot.lane.b32.xlu0 %v455_v21, %s2290_s13  ;;  %v527_v26 = vsel %vm522_vm2, %v455_v21, 0  ;;  %v394_v27 = vpack.c.bf16 %v393_v24, %v393_v24 }
 0x17e   : > { %1812 = vmatpush3.bf16.xpose.msra.mxu1 %v527_v26 }
 0x17f   : > { %1823 = vmatprep.subr.bf16.mxu1 %v2287_v0 }
 0x181   : > { %754 = vrot.lane.b32.xlu1 %v394_v27, %s2289_s12  ;;  %633 = vrot.lane.b32.xlu0 %v394_v27, %s2290_s13  ;;  %v510_v60 = vpop.f32.mrb[4].mxu0 }
 0x182   : > { %v511_v61 = vadd.f32 %v510_v60, %v463_v58  ;;  %v1809_v62 = vpop.f32.mrb[5].mxu0 }
 0x183   : > { %v513_v63 = vpop.f32.mrb[6].mxu0 }
 0x184   : > { %v520_v1 = vmul.f32 %v519_v59, %v511_v61  ;;  %v1810_v2 = vpop.f32.mrb[7].mxu0 }
 0x185   : > { %873 = vrot.lane.b32.xlu1 %v394_v27, %s2291_s30  ;;  %875 = vrot.lane.b32.xlu0 %v455_v21, %s2291_s30 }
 0x186   : > { %1814 = vmatmul.mubr.msk.bf16.vlgmr.msra.gmra.mrb[4].mxu1 %vm522_vm2, %v394_v27  ;;  %v2680_v3 = vpack.c.bf16 %v520_v1, %v520_v1 }
 0x187   : > { %1825 = vmatprep.mubr.msk.bf16.mxu1 %vm2288_vm0, %v2287_v0 }
 0x188   : > { %v587_v4 = vsel %vm585_vm4, %v2680_v3, 0 }
 0x189   : > { %992 = vrot.lane.b32.xlu1 %v394_v27, %s2292_s7  ;;  %994 = vrot.lane.b32.xlu0 %v455_v21, %s2292_s7 }
 0x18a   : > { %1818 = vmatpush3.bf16.msra.mxu0 %v587_v4 }
 0x18b   : > { %1829 = vmatprep.subr.bf16.mxu0 %v2287_v0 }
 0x18d   : > { %1111 = vrot.lane.b32.xlu1 %v394_v27, %s2293_s10  ;;  %1113 = vrot.lane.b32.xlu0 %v455_v21, %s2293_s10 }
 0x191   : > { %1230 = vrot.lane.b32.xlu1 %v394_v27, %s2294_s20  ;;  %1232 = vrot.lane.b32.xlu0 %v455_v21, %s2294_s20 }
 0x195   : > { %1349 = vrot.lane.b32.xlu1 %v394_v27, %s2295_s11  ;;  %1351 = vrot.lane.b32.xlu0 %v455_v21, %s2295_s11 }
 0x1ef   : > { %v637_v30 = vpop.permute.xlu0 %636  ;;  %v757_v32 = vpop.permute.xlu1 %756 }
 0x1f0   : > { %v642_v31 = vsel %vm522_vm2, %v637_v30, 0  ;;  %v762_v34 = vsel %vm522_vm2, %v757_v32, 0 }
 0x1f1   : > { %1824 = vmatpush3.bf16.xpose.msra.mxu1 %v642_v31 }
 0x1f2   : > { %1835 = vmatprep.subr.bf16.mxu1 %v2287_v0 }
 0x1f3   : > { %v634_v33 = vpop.permute.xlu0 %633  ;;  %v755_v36 = vpop.permute.xlu1 %754 }
 0x1f7   : > { %v876_v35 = vpop.permute.xlu0 %875  ;;  %v874_v39 = vpop.permute.xlu1 %873 }
 0x1f8   : > { %1826 = vmatmul.mubr.msk.bf16.vlgmr.msra.gmra.mrb[8].mxu1 %vm522_vm2, %v634_v33  ;;  %v881_v37 = vsel %vm522_vm2, %v876_v35, 0 }
 0x1f9   : > { %1836 = vmatpush3.bf16.xpose.msra.mxu1 %v762_v34  ;;  %1837 = vmatprep.mubr.msk.bf16.mxu1 %vm2288_vm0, %v2287_v0 }
 0x1fa   : > { %1847 = vmatprep.subr.bf16.mxu1 %v2287_v0 }
 0x1fb   : > { %v995_v38 = vpop.permute.xlu0 %994  ;;  %v993_v42 = vpop.permute.xlu1 %992 }
 0x1fc   : > { %v1000_v40 = vsel %vm522_vm2, %v995_v38, 0 }
 0x1ff   : > { %v1114_v41 = vpop.permute.xlu0 %1113  ;;  %v1112_v45 = vpop.permute.xlu1 %1111 }
 0x200   : > { %1838 = vmatmul.mubr.msk.bf16.vlgmr.msra.gmra.mrb[12].mxu1 %vm522_vm2, %v755_v36  ;;  %v1119_v43 = vsel %vm522_vm2, %v1114_v41, 0 }
 0x201   : > { %1848 = vmatpush3.bf16.xpose.msra.mxu1 %v881_v37  ;;  %1849 = vmatprep.mubr.msk.bf16.mxu1 %vm2288_vm0, %v2287_v0 }
 0x202   : > { %1859 = vmatprep.subr.bf16.mxu1 %v2287_v0 }
 0x203   : > { %v1233_v44 = vpop.permute.xlu0 %1232  ;;  %v1231_v48 = vpop.permute.xlu1 %1230 }
 0x204   : > { %v1238_v46 = vsel %vm522_vm2, %v1233_v44, 0 }
 0x207   : > { %v1352_v47 = vpop.permute.xlu0 %1351  ;;  %v1350_v50 = vpop.permute.xlu1 %1349 }
 0x208   : > { %1850 = vmatmul.mubr.msk.bf16.vlgmr.msra.gmra.mrb[16].mxu1 %vm522_vm2, %v874_v39  ;;  %v1357_v49 = vsel %vm522_vm2, %v1352_v47, 0 }
 0x209   : > { %1860 = vmatpush3.bf16.xpose.msra.mxu1 %v1000_v40  ;;  %1861 = vmatprep.mubr.msk.bf16.mxu1 %vm2288_vm0, %v2287_v0 }
 0x20a   : > { %1871 = vmatprep.subr.bf16.mxu1 %v2287_v0 }
 0x210   : > { %1862 = vmatmul.mubr.msk.bf16.vlgmr.msra.gmra.mrb[20].mxu1 %vm522_vm2, %v993_v42 }
 0x211   : > { %1872 = vmatpush3.bf16.xpose.msra.mxu1 %v1119_v43  ;;  %1873 = vmatprep.mubr.msk.bf16.mxu1 %vm2288_vm0, %v2287_v0 }
 0x212   : > { %1883 = vmatprep.subr.bf16.mxu1 %v2287_v0 }
 0x218   : > { %1874 = vmatmul.mubr.msk.bf16.vlgmr.msra.gmra.mrb[24].mxu1 %vm522_vm2, %v1112_v45 }
 0x219   : > { %1884 = vmatpush3.bf16.xpose.msra.mxu1 %v1238_v46  ;;  %1885 = vmatprep.mubr.msk.bf16.mxu1 %vm2288_vm0, %v2287_v0 }
 0x21a   : > { %1895 = vmatprep.subr.bf16.mxu1 %v2287_v0 }
 0x220   : > { %1886 = vmatmul.mubr.msk.bf16.vlgmr.msra.gmra.mrb[28].mxu1 %vm522_vm2, %v1231_v48 }
 0x221   : > { %1896 = vmatpush3.bf16.xpose.msra.mxu1 %v1357_v49  ;;  %1897 = vmatprep.mubr.msk.bf16.mxu1 %vm2288_vm0, %v2287_v0 }
 0x222   : > { %1907 = vmatprep.subr.bf16.mxu1 %v2287_v0 }
 0x228   : > { %1898 = vmatmul.mubr.msk.bf16.vlgmr.msra.gmra.mrb[32].mxu1 %vm522_vm2, %v1350_v50 }
 0x229   : > { %1911 = vmatprep.mubr.msk.bf16.mxu1 %vm2288_vm0, %v2287_v0 }
 0x259   : > { %v563_v51 = vpop.f32.mrb[4].mxu1 }
 0x25a   : > { %v1815_v52 = vpop.f32.mrb[5].mxu1  ;;  %v570_v53 = vsel %vm569_vm3, %v563_v51, -inf }
 0x25b   : > { %571 = vmax.xlane.f32.xlu0 %v570_v53  ;;  %v566_v54 = vpop.f32.mrb[6].mxu1 }
 0x25c   : > { %v1816_v55 = vpop.f32.mrb[7].mxu1 }
 0x2cb   : > { %v678_v6 = vpop.f32.mrb[8].mxu1 }
 0x2cc   : > { %v1827_v7 = vpop.f32.mrb[9].mxu1  ;;  %v684_v9 = vsel %vm569_vm3, %v678_v6, -inf }
 0x2cd   : > { %685 = vmax.xlane.f32.xlu1 %v684_v9  ;;  %v681_v11 = vpop.f32.mrb[10].mxu1 }
 0x2ce   : > { %v1828_v12 = vpop.f32.mrb[11].mxu1 }
 0x2d3   : > { %v798_v13 = vpop.f32.mrb[12].mxu1 }
 0x2d4   : > { %v1839_v14 = vpop.f32.mrb[13].mxu1  ;;  %v804_v15 = vsel %vm569_vm3, %v798_v13, -inf }
 0x2d5   : > { %805 = vmax.xlane.f32.xlu0 %v804_v15  ;;  %v801_v16 = vpop.f32.mrb[14].mxu1 }
 0x2d6   : > { %v1840_v17 = vpop.f32.mrb[15].mxu1 }
 0x2db   : > { %v917_v18 = vpop.f32.mrb[16].mxu1 }
 0x2dc   : > { %v1851_v19 = vpop.f32.mrb[17].mxu1  ;;  %v923_v20 = vsel %vm569_vm3, %v917_v18, -inf }
 0x2dd   : > { %924 = vmax.xlane.f32.xlu0 %v923_v20  ;;  %v920_v21 = vpop.f32.mrb[18].mxu1 }
 0x2de   : > { %v1852_v22 = vpop.f32.mrb[19].mxu1 }
 0x2e3   : > { %v2688_v23 = vpop.f32.mrb[20].mxu1 }
 0x2e4   : > { %v1863_v24 = vpop.f32.mrb[21].mxu1  ;;  %v1042_v25 = vsel %vm569_vm3, %v2688_v23, -inf }
 0x2e5   : > { %1043 = vmax.xlane.f32.xlu1 %v1042_v25  ;;  %v1039_v26 = vpop.f32.mrb[22].mxu1 }
 0x2e6   : > { %v1864_v27 = vpop.f32.mrb[23].mxu1 }
 0x2e8   : > { %v572_v28 = vpop.xlane.xlu0 %571 }
 0x2e9   : > { %v573_v29 = vsub.f32 %v563_v51, %v572_v28 }
 0x2eb   : > { %v574_v30 = vmul.f32 1.442695, %v573_v29  ;;  %v2692_v31 = vpop.f32.mrb[24].mxu1 }
 0x2ec   : > { %v1875_v32 = vpop.f32.mrb[25].mxu1  ;;  %v1161_v33 = vsel %vm569_vm3, %v2692_v31, -inf }
 0x2ed   : > { %2028 = vpow2.f32 %v574_v30  ;;  %1162 = vmax.xlane.f32.xlu0 %v1161_v33  ;;  %v1158_v34 = vpop.f32.mrb[26].mxu1 }
 0x2ee   : > { %v1876_v35 = vpop.f32.mrb[27].mxu1 }
 0x2f3   : > { %v1274_v36 = vpop.f32.mrb[28].mxu1 }
 0x2f4   : > { %v1887_v37 = vpop.f32.mrb[29].mxu1  ;;  %v1280_v38 = vsel %vm569_vm3, %v1274_v36, -inf }
 0x2f5   : > { %1281 = vmax.xlane.f32.xlu1 %v1280_v38  ;;  %v1277_v39 = vpop.f32.mrb[30].mxu1 }
 0x2f6   : > { %v1888_v40 = vpop.f32.mrb[31].mxu1 }
 0x2f7   : > { %v2029_v41 = vpop.eup %2028 }
 0x2f8   : > { %v576_v42 = vsel %vm569_vm3, %v2029_v41, 0.0 }
 0x2f9   : > { %577 = vadd.xlane.f32.xlu1 %v576_v42 }
 0x2fb   : > { %v1393_v43 = vpop.f32.mrb[32].mxu1 }
 0x2fc   : > { %v1899_v44 = vpop.f32.mrb[33].mxu1  ;;  %v1399_v45 = vsel %vm569_vm3, %v1393_v43, -inf }
 0x2fd   : > { %1400 = vmax.xlane.f32.xlu0 %v1399_v45  ;;  %v1396_v46 = vpop.f32.mrb[34].mxu1 }
 0x2fe   : > { %v1900_v47 = vpop.f32.mrb[35].mxu1 }
 0x30a   : > { %816 = vrot.lane.b32.xlu1 %v2680_v3, %s2289_s12  ;;  %s2302_s12 = smov 28  }
 0x313   : > { %697 = vrot.lane.b32.xlu0 %v2680_v3, %s2290_s13  ;;  %s1733_s13 = sshll.u32 %s2360_s27, 7  ;;  %s2303_s27 = smov [#allocation12]  }
 0x35a   : > { %v686_v48 = vpop.xlane.xlu1 %685 }
 0x35b   : > { %v687_v49 = vsub.f32 %v678_v6, %v686_v48 }
 0x35d   : > { %v688_v50 = vmul.f32 1.442695, %v687_v49 }
 0x35f   : > { %2030 = vpow2.f32 %v688_v50 }
 0x362   : > { %v806_v51 = vpop.xlane.xlu0 %805 }
 0x363   : > { %v807_v52 = vsub.f32 %v798_v13, %v806_v51 }
 0x365   : > { %v808_v53 = vmul.f32 1.442695, %v807_v52 }
 0x367   : > { %2032 = vpow2.f32 %v808_v53 }
 0x369   : > { %v2703_v54 = vpop.eup %2030 }
 0x36a   : > { %v925_v55 = vpop.xlane.xlu0 %924  ;;  %v690_v56 = vsel %vm569_vm3, %v2703_v54, 0.0 }
 0x36b   : > { %v926_v57 = vsub.f32 %v917_v18, %v925_v55  ;;  %691 = vadd.xlane.f32.xlu0 %v690_v56 }
 0x36d   : > { %v927_v58 = vmul.f32 1.442695, %v926_v57 }
 0x36f   : > { %2034 = vpow2.f32 %v927_v58 }
 0x371   : > { %v2707_v59 = vpop.eup %2032 }
 0x372   : > { %v810_v60 = vsel %vm569_vm3, %v2707_v59, 0.0  ;;  %v1044_v63 = vpop.xlane.xlu1 %1043 }
 0x373   : > { %811 = vadd.xlane.f32.xlu1 %v810_v60  ;;  %v1045_v9 = vsub.f32 %v2688_v23, %v1044_v63 }
 0x375   : > { %v1046_v15 = vmul.f32 1.442695, %v1045_v9 }
 0x379   : > { %v2711_v61 = vpop.eup %2034 }
 0x37a   : > { %v929_v62 = vsel %vm569_vm3, %v2711_v61, 0.0  ;;  %v1163_v4 = vpop.xlane.xlu0 %1162 }
 0x37b   : > { %930 = vadd.xlane.f32.xlu0 %v929_v62  ;;  %v1164_v16 = vsub.f32 %v2692_v31, %v1163_v4 }
 0x37d   : > { %v1165_v18 = vmul.f32 1.442695, %v1164_v16 }
 0x382   : > { %v1282_v1 = vpop.xlane.xlu1 %1281 }
 0x383   : > { %v1283_v17 = vsub.f32 %v1274_v36, %v1282_v1 }
 0x384   : > { %935 = vrot.lane.b32.xlu1 %v2680_v3, %s2291_s30  ;;  %s324_s30 = scalar_lea.vmem [#allocation12], %s1691_s29  ;;  %s2208_s29 = sshll.u32 %s2303_s27, 4  ;;  %s2209_s29 = int_to_ptr.vmem [resolvable:$false] %s2208_s29 }
 0x385   : > { %v1284_v20 = vmul.f32 1.442695, %v1283_v17 }
 0x386   : > { %v578_v2 = vpop.xlane.xlu1 %577 }
 0x387   : > { %2036 = vrcp.f32 %v578_v2 }
 0x388   : > { %2038 = vpow2.f32 %v1046_v15 }
 0x389   : > { %2040 = vpow2.f32 %v1165_v18 }
 0x38a   : > { %v1401_v6 = vpop.xlane.xlu0 %1400  ;;  %2042 = vpow2.f32 %v1284_v20  ;;  %v817_v31 = vpop.permute.xlu1 %816 }
 0x38b   : > { %v1402_v19 = vsub.f32 %v1393_v43, %v1401_v6  ;;  %v822_v36 = vsel %vm585_vm4, %v817_v31, 0 }
 0x38d   : > { %v1403_v21 = vmul.f32 1.442695, %v1402_v19 }
 0x38e   : > { %v698_v11 = vpop.permute.xlu0 %697 }
 0x38f   : > { %v703_v14 = vsel %vm585_vm4, %v698_v11, 0  ;;  %2044 = vpow2.f32 %v1403_v21 }
 0x391   : > { %1054 = vrot.lane.b32.xlu0 %v2680_v3, %s2292_s7  ;;  %v2037_v7 = vpop.eup %2036  ;;  %s1573_s7 = sshll.u32 %s324_s30, 4  ;;  %s2796_s7 = int_to_ptr.vmem [resolvable:$true] %s1573_s7 }
 0x392   : > { %v580_v12 = vmul.f32 %v2037_v7, %v2029_v41  ;;  %v2039_v22 = vpop.eup %2038  ;;  %p2211_p12 = scmp.lt.s32.totalorder %s2796_s7, %s2209_s29 }
 0x393   : > { %v1048_v23 = vsel %vm569_vm3, %v2039_v22, 0.0  ;;  %v2041_v24 = vpop.eup %2040 }
 0x394   : > { %v581_v13 = vpack.c.bf16 %v580_v12, %v580_v12  ;;  %v2727_v25 = vpop.eup %2042  ;;  %v1167_v26 = vsel %vm569_vm3, %v2041_v24, 0.0 }
 0x395   : > { %v1286_v28 = vsel %vm569_vm3, %v2727_v25, 0.0 }
 0x396   : > { %1820 = vmatmul.mubr.msk.bf16.vlgmr.msra.gmra.mrb[8].mxu0 %vm569_vm3, %v581_v13 }
 0x397   : > { %1830 = vmatpush3.bf16.msra.mxu0 %v703_v14  ;;  %1831 = vmatprep.mubr.msk.bf16.mxu0 %vm2288_vm0, %v2287_v0 }
 0x398   : > { %1841 = vmatprep.subr.bf16.mxu0 %v2287_v0 }
 0x399   : > { %v2730_v27 = vpop.eup %2044 }
 0x39a   : > { %v1405_v29 = vsel %vm569_vm3, %v2730_v27, 0.0 }
 0x3a8   : > { %1049 = vadd.xlane.f32.xlu1 %v1048_v23 }
 0x3ac   : > { %1168 = vadd.xlane.f32.xlu1 %v1167_v26 }
 0x3b0   : > { %1287 = vadd.xlane.f32.xlu0 %v1286_v28  ;;  %1406 = vadd.xlane.f32.xlu1 %v1405_v29 }
 0x3c1   : > { %1173 = vrot.lane.b32.xlu1 %v2680_v3, %s2293_s10 }
 0x3c6   : > { %1292 = vrot.lane.b32.xlu0 %v2680_v3, %s2294_s20 }
 0x3ca   : > { %1411 = vrot.lane.b32.xlu0 %v2680_v3, %s2295_s11  ;;  %s2794_s11 = scalar_lea.hbm %s2845_s6, %s1733_s13 }
 0x3f8   : > { %v692_v30 = vpop.xlane.xlu0 %691 }
 0x3f9   : > { %2046 = vrcp.f32 %v692_v30 }
 0x400   : > { %v812_v32 = vpop.xlane.xlu1 %811 }
 0x401   : > { %2048 = vrcp.f32 %v812_v32 }
 0x403   : > { %v2047_v33 = vpop.eup %2046 }
 0x404   : > { %v694_v34 = vmul.f32 %v2047_v33, %v2703_v54  ;;  %v936_v39 = vpop.permute.xlu1 %935 }
 0x405   : > { %v941_v41 = vsel %vm585_vm4, %v936_v39, 0  ;;  %v2026_v39 = vld [vmem:[#allocation11] sm:$0xff]  }
 0x406   : > { %v695_v35 = vpack.c.bf16 %v694_v34, %v694_v34  ;;  %1908 = vmatpush3.bf16.msra.mxu1 %v2026_v39 }
 0x407   : > { %1909 = vmatprep.subr.bf16.mxu1 %v2287_v0 }
 0x408   : > { %1832 = vmatmul.mubr.msk.bf16.vlgmr.msra.gmra.mrb[12].mxu0 %vm569_vm3, %v695_v35  ;;  %v931_v37 = vpop.xlane.xlu0 %930 }
 0x409   : > { %1842 = vmatpush3.bf16.msra.mxu0 %v822_v36  ;;  %2050 = vrcp.f32 %v931_v37  ;;  %1843 = vmatprep.mubr.msk.bf16.mxu0 %vm2288_vm0, %v2287_v0 }
 0x40a   : > { %1853 = vmatprep.subr.bf16.mxu0 %v2287_v0 }
 0x40b   : > { %v2049_v3 = vpop.eup %2048 }
 0x40c   : > { %v814_v38 = vmul.f32 %v2049_v3, %v2707_v59  ;;  %v1055_v44 = vpop.permute.xlu0 %1054 }
 0x40d   : > { %v1060_v46 = vsel %vm585_vm4, %v1055_v44, 0 }
 0x40e   : > { %v815_v40 = vpack.c.bf16 %v814_v38, %v814_v38 }
 0x410   : > { %1844 = vmatmul.mubr.msk.bf16.vlgmr.msra.gmra.mrb[16].mxu0 %vm569_vm3, %v815_v40 }
 0x411   : > { %1854 = vmatpush3.bf16.msra.mxu0 %v941_v41  ;;  %1855 = vmatprep.mubr.msk.bf16.mxu0 %vm2288_vm0, %v2287_v0  ;;  %v2027_v41 = vld [vmem:[#allocation11 + $0x8] sm:$0xff]  }
 0x412   : > { %1865 = vmatprep.subr.bf16.mxu0 %v2287_v0  ;;  %1910 = vmatpush3.bf16.msra.mxu1 %v2027_v41 }
 0x413   : > { %v2051_v42 = vpop.eup %2050 }
 0x414   : > { %v933_v43 = vmul.f32 %v2051_v42, %v2711_v61 }
 0x416   : > { %v934_v45 = vpack.c.bf16 %v933_v43, %v933_v43 }
 0x418   : > { %1856 = vmatmul.mubr.msk.bf16.vlgmr.msra.gmra.mrb[20].mxu0 %vm569_vm3, %v934_v45 }
 0x419   : > { %1866 = vmatpush3.bf16.msra.mxu0 %v1060_v46  ;;  %1867 = vmatprep.mubr.msk.bf16.mxu0 %vm2288_vm0, %v2287_v0 }
 0x41a   : > { %1877 = vmatprep.subr.bf16.mxu0 %v2287_v0 }
 0x435   : > { %v1050_v47 = vpop.xlane.xlu1 %1049 }
 0x436   : > { %2052 = vrcp.f32 %v1050_v47 }
 0x439   : > { %v1169_v48 = vpop.xlane.xlu1 %1168 }
 0x43a   : > { %2054 = vrcp.f32 %v1169_v48 }
 0x43d   : > { %v1407_v49 = vpop.xlane.xlu1 %1406  ;;  %v1288_v50 = vpop.xlane.xlu0 %1287 }
 0x43e   : > { %2056 = vrcp.f32 %v1288_v50 }
 0x43f   : > { %2058 = vrcp.f32 %v1407_v49 }
 0x440   : > { %v2053_v51 = vpop.eup %2052 }
 0x441   : > { %v1052_v52 = vmul.f32 %v2053_v51, %v2039_v22  ;;  %v1174_v53 = vpop.permute.xlu1 %1173  ;;  %v1293_v58 = vpop.permute.xlu0 %1292 }
 0x442   : > { %v1179_v56 = vsel %vm585_vm4, %v1174_v53, 0  ;;  %v1298_v61 = vsel %vm585_vm4, %v1293_v58, 0  ;;  %v1470_v58 = vsub.s32 3, %v2605_v8 }
 0x443   : > { %v1053_v54 = vpack.c.bf16 %v1052_v52, %v1052_v52 }
 0x444   : > { %v2055_v55 = vpop.eup %2054 }
 0x445   : > { %1868 = vmatmul.mubr.msk.bf16.vlgmr.msra.gmra.mrb[24].mxu0 %vm569_vm3, %v1053_v54  ;;  %v1171_v57 = vmul.f32 %v2055_v55, %v2041_v24  ;;  %v1412_v63 = vpop.permute.xlu0 %1411 }
 0x446   : > { %1878 = vmatpush3.bf16.msra.mxu0 %v1179_v56  ;;  %1879 = vmatprep.mubr.msk.bf16.mxu0 %vm2288_vm0, %v2287_v0  ;;  %v1417_v4 = vsel %vm585_vm4, %v1412_v63, 0 }
 0x447   : > { %1889 = vmatprep.subr.bf16.mxu0 %v2287_v0  ;;  %v1172_v59 = vpack.c.bf16 %v1171_v57, %v1171_v57 }
 0x448   : > { %v2057_v60 = vpop.eup %2056 }
 0x449   : > { %v1290_v62 = vmul.f32 %v2057_v60, %v2727_v25  ;;  %v2059_v2 = vpop.eup %2058 }
 0x44a   : > { %v1409_v6 = vmul.f32 %v2059_v2, %v2730_v27 }
 0x44b   : > { %v1291_v1 = vpack.c.bf16 %v1290_v62, %v1290_v62 }
 0x44c   : > { %v1410_v7 = vpack.c.bf16 %v1409_v6, %v1409_v6 }
 0x44d   : > { %1880 = vmatmul.mubr.msk.bf16.vlgmr.msra.gmra.mrb[28].mxu0 %vm569_vm3, %v1172_v59  ;;  %v1471_v59 = vrot.slane %v2611_v10, %v1470_v58 }
 0x44e   : > { %1890 = vmatpush3.bf16.msra.mxu0 %v1298_v61  ;;  %1891 = vmatprep.mubr.msk.bf16.mxu0 %vm2288_vm0, %v2287_v0 }
 0x44f   : > { %1901 = vmatprep.subr.bf16.mxu0 %v2287_v0  ;;  %v1472_v60 = vadd.f32 %v1471_v59, %v2593_v5 }
 0x455   : > { %1892 = vmatmul.mubr.msk.bf16.vlgmr.msra.gmra.mrb[32].mxu0 %vm569_vm3, %v1291_v1 }
 0x456   : > { %1902 = vmatpush3.bf16.msra.mxu0 %v1417_v4  ;;  %1903 = vmatprep.mubr.msk.bf16.mxu0 %vm2288_vm0, %v2287_v0 }
 0x45d   : > { %1904 = vmatmul.mubr.msk.bf16.vlgmr.msra.gmra.mrb[36].mxu0 %vm569_vm3, %v1410_v7 }
 0x469   : > { %v623_v9 = vpop.f32.mrb[8].mxu0 }
 0x46a   : > { %v629_v11 = vpack.c.bf16 %v623_v9, %v623_v9  ;;  %v1821_v12 = vpop.f32.mrb[9].mxu0 }
 0x46b   : > { %v626_v13 = vpop.f32.mrb[10].mxu0 }
 0x46c   : > { %631 = vst.msk [vmem:[#allocation2] sm:$0xf] %vm630_vm5, %v629_v11  ;;  %v1822_v14 = vpop.f32.mrb[11].mxu0 }
 0x4db   : > { %v739_v15 = vpop.f32.mrb[12].mxu0 }
 0x4dc   : > { %v1736_v16 = vpack.c.bf16 %v739_v15, %v739_v15  ;;  %v1833_v17 = vpop.f32.mrb[13].mxu0  ;;  %v1550_v15 = vsub.s32 4, %v2605_v8 }
 0x4dd   : > { %v742_v18 = vpop.f32.mrb[14].mxu0 }
 0x4de   : > { %749 = vrot.lane.b32.xlu1 %v1736_v16, %s2296_s9  ;;  %v1834_v19 = vpop.f32.mrb[15].mxu0  ;;  %v1555_v16 = vsub.s32 5, %v2605_v8  ;;  %v1551_v17 = vrot.slane %v2611_v10, %v1550_v15  ;;  %s1560_s9 = scalar_lea.sflag [#allocation5], %s2567_s14 }
 0x4e3   : > { %v858_v20 = vpop.f32.mrb[16].mxu0 }
 0x4e4   : > { %v1737_v21 = vpack.c.bf16 %v858_v20, %v858_v20  ;;  %v1845_v22 = vpop.f32.mrb[17].mxu0  ;;  %v1556_v20 = vrot.slane %v2611_v10, %v1555_v16 }
 0x4e5   : > { %v861_v23 = vpop.f32.mrb[18].mxu0 }
 0x4e6   : > { %868 = vrot.lane.b32.xlu0 %v1737_v21, %s2297_s16  ;;  %v1846_v24 = vpop.f32.mrb[19].mxu0  ;;  %s2204_s16 = scalar_lea.vmem %s2796_s7, 128 }
 0x4e7   : > { %p2205_p6 = scmp.ne.s32.totalorder %s2796_s7, %s2204_s16 }
 0x4e9   : > { %p2206_p7 = pnand %p2205_p6, %p2863_p5 }
 0x4eb   : > { %v977_v25 = vpop.f32.mrb[20].mxu0  ;;  %p2207_p9 = pneg %p2206_p7 }
 0x4ec   : > { %v1738_v26 = vpack.c.bf16 %v977_v25, %v977_v25  ;;  %v1857_v27 = vpop.f32.mrb[21].mxu0 }
 0x4ed   : > { %v980_v28 = vpop.f32.mrb[22].mxu0 }
 0x4ee   : > { %987 = vrot.lane.b32.xlu1 %v1738_v26, %s2298_s8  ;;  %v1858_v29 = vpop.f32.mrb[23].mxu0  ;;  %s2210_s8 = scalar_lea.vmem %s2209_s29, 256 }
 0x4ef   : > { %p2212_p3 = scmp.lt.s32.totalorder %s2210_s8, %s2204_s16 }
 0x4f1   : > { %p2213_p13 = por %p2212_p3, %p2211_p12 }
 0x4f3   : > { %p2214_p0 = pnand %p2213_p13, %p2207_p9 }
 0x518   : > { %v1096_v30 = vpop.f32.mrb[24].mxu0 }
 0x519   : > { %v1739_v31 = vpack.c.bf16 %v1096_v30, %v1096_v30  ;;  %v1869_v32 = vpop.f32.mrb[25].mxu0 }
 0x51a   : > { %v1099_v33 = vpop.f32.mrb[26].mxu0 }
 0x51b   : > { %1106 = vrot.lane.b32.xlu0 %v1739_v31, %s2299_s18  ;;  %v1870_v34 = vpop.f32.mrb[27].mxu0 }
 0x520   : > { %v1215_v35 = vpop.f32.mrb[28].mxu0 }
 0x521   : > { %v1740_v36 = vpack.c.bf16 %v1215_v35, %v1215_v35  ;;  %v1881_v37 = vpop.f32.mrb[29].mxu0 }
 0x522   : > { %v1218_v3 = vpop.f32.mrb[30].mxu0 }
 0x523   : > { %1225 = vrot.lane.b32.xlu1 %v1740_v36, %s2300_s28  ;;  %v1882_v38 = vpop.f32.mrb[31].mxu0 }
 0x528   : > { %v1334_v40 = vpop.f32.mrb[32].mxu0 }
 0x529   : > { %v1741_v42 = vpack.c.bf16 %v1334_v40, %v1334_v40  ;;  %v1893_v43 = vpop.f32.mrb[33].mxu0 }
 0x52a   : > { %v1337_v44 = vpop.f32.mrb[34].mxu0 }
 0x52b   : > { %1344 = vrot.lane.b32.xlu0 %v1741_v42, %s2301_s19  ;;  %v1894_v45 = vpop.f32.mrb[35].mxu0 }
 0x530   : > { %v1453_v46 = vpop.f32.mrb[36].mxu0 }
 0x531   : > { %v1742_v47 = vpack.c.bf16 %v1453_v46, %v1453_v46  ;;  %v1905_v48 = vpop.f32.mrb[37].mxu0 }
 0x532   : > { %v1456_v49 = vpop.f32.mrb[38].mxu0 }
 0x533   : > { %1463 = vrot.lane.b32.xlu1 %v1742_v47, %s2302_s12  ;;  %v1906_v50 = vpop.f32.mrb[39].mxu0 }
 0x550   : > { %v750_v51 = vpop.permute.xlu1 %749 }
 0x551   : > { %753 = vst.msk [vmem:[#allocation2] sm:$0xf] %vm752_vm6, %v750_v51 }
 0x558   : > { %v869_v52 = vpop.permute.xlu0 %868 }
 0x559   : > { %872 = vst.msk [vmem:[#allocation2] sm:$0xf] %vm871_vm7, %v869_v52 }
 0x560   : > { %v988_v0 = vpop.permute.xlu1 %987 }
 0x561   : > { %991 = vst.msk [vmem:[#allocation2] sm:$0xf] %vm990_vm8, %v988_v0 }
 0x58d   : > { %v1107_v53 = vpop.permute.xlu0 %1106 }
 0x58e   : > { %1110 = vst.msk [vmem:[#allocation2] sm:$0xf] %vm1109_vm9, %v1107_v53 }
 0x595   : > { %v1226_v54 = vpop.permute.xlu1 %1225 }
 0x596   : > { %1229 = vst.msk [vmem:[#allocation2] sm:$0xf] %vm1228_vm10, %v1226_v54 }
 0x59d   : > { %v1345_v55 = vpop.permute.xlu0 %1344 }
 0x59e   : > { %1348 = vst.msk [vmem:[#allocation2] sm:$0xf] %vm1347_vm11, %v1345_v55 }
 0x5a5   : > { %v1464_v56 = vpop.permute.xlu1 %1463 }
 0x5a6   : > { %1467 = vst.msk [vmem:[#allocation2] sm:$0xf] %vm1466_vm12, %v1464_v56 }
 0x5ad   : > { %v1473_v57 = vld [vmem:[#allocation2] sm:$0xf] }
 0x5ae   : > { %1912 = vmatmul.mubr.msk.bf16.vlgmr.msra.gmra.mrb[36].mxu1 %vm349_vm1, %v1473_v57 }
 0x681   : > { %v1527_v61 = vpop.f32.mrb[36].mxu1 }
 0x682   : > { %v1533_v62 = vadd.f32 %v1527_v61, %v1472_v60  ;;  %v1913_v63 = vpop.f32.mrb[37].mxu1 }
 0x683   : > { %v1530_v1 = vpop.f32.mrb[38].mxu1 }
 0x684   : > { %v1914_v2 = vpop.f32.mrb[39].mxu1  ;;  %v1534_v4 = vsel %vm349_vm1, %v1533_v62, 0.0 }
 0x685   : > { %1535 = vadd.xlane.f32.xlu0 %v1534_v4 }
 0x712   : > { %v1536_v6 = vpop.xlane.xlu0 %1535 }
 0x713   : > { %v1538_v7 = vmul.f32 0.03125, %v1536_v6 }
 0x715   : > { %v1539_v9 = vsub.f32 %v1533_v62, %v1538_v7 }
 0x717   : > { %v1540_v11 = vmul.f32 %v1539_v9, %v1539_v9 }
 0x719   : > { %v1541_v12 = vsel %vm349_vm1, %v1540_v11, 0.0 }
 0x71a   : > { %1542 = vadd.xlane.f32.xlu1 %v1541_v12 }
 0x7a7   : > { %v1543_v13 = vpop.xlane.xlu1 %1542 }
 0x7a8   : > { %v1544_v14 = vmul.f32 0.03125, %v1543_v13 }
 0x7aa   : > { %v1545_v5 = vadd.f32 1e-05, %v1544_v14 }
 0x7ac   : > { %2060 = vrsqrt.f32 %v1545_v5 }
 0x7b6   : > { %v2061_v18 = vpop.eup %2060 }
 0x7b7   : > { %v1547_v19 = vmul.f32 %v2061_v18, %v1539_v9 }
 0x7b9   : > { %v1552_v21 = vmul.f32 %v1551_v17, %v1547_v19 }
 0x7bb   : > { %v1557_v22 = vadd.f32 %v1556_v20, %v1552_v21 }
 0x7bd   : > { %1558 = vst.msk [vmem:[%s324_s30] sm:$0xff] %vm349_vm1, %v1557_v22 }
 0x7be   : > { %2217 = shalt.err (!%p2214_p0)
}
 0x7bf   : > { %s2218_s14 = scalar_lea.hbm %s2794_s11, 128  ;;  %s2222_s19 = scalar_lea.hbm %s2845_s6, 256 }
 0x7c0   : > { %p2219_p2 = scmp.ne.s32.totalorder %s2794_s11, %s2218_s14  ;;  %p2223_p10 = scmp.lt.u32.totalorder %s2794_s11, %s2845_s6 }
 0x7c1   : > { %p2224_p11 = scmp.lt.u32.totalorder %s2222_s19, %s2218_s14  ;;  %p2226_p6 = scmp.lt.u32.totalorder %s2218_s14, %s2794_s11 }
 0x7c2   : > { %p2220_p8 = pnand %p2219_p2, %p2863_p5 }
 0x7c3   : > { %p2225_p1 = por %p2224_p11, %p2223_p10 }
 0x7c4   : > { %p2221_p4 = pneg %p2220_p8 }
 0x7c5   : > { %p2227_p7 = por %p2226_p6, %p2225_p1 }
 0x7c7   : > { %p2228_p9 = pnand %p2227_p7, %p2221_p4 }
 0x7c9   : > { %2231 = shalt.err (!%p2228_p9)
}
 0x7ca   : > { %1933 = dma.vmem_to_hbm [thread:$0]  (%p2863_p5), %s2796_s7, 128, %s2794_s11, %s1560_s9  }
 0x7cb PF: > { %s1585_s30 = sand.u32 1, %s2266_s21   ;;  %p2864_p12 = scmp.ne.s32.totalorder %s2856_s25, 0 }
 0x7cc   : > { %p2865_p3 = scmp.ge.s32.totalorder %s2278_s24, 2  ;;  %s1586_s10 = scalar_lea.sflag [#allocation5], %s1585_s30 }
 0x7ce   : > { %p1953_p13 = pnand %p2865_p3, %p2864_p12 }
 0x7d0   : > { %2261 = dma.done.wait (!%p1953_p13), %s1586_s10, 128  }
 0x7d1   : > { %2263 = vsyncadd (!%p1953_p13), %s1586_s10, 4294967168  ;;  %p21_p0 = scmp.ge.s32.totalorder %s2491_s15, 4   ;;  %s2866_s21 = smov %s2270_s22 }
 0x7d2   : > { %s2867_s22 = smov %s2274_s23  ;;  %s2868_s23 = smov %s2502_s26 }
 0x7d3   : > { %s2869_s24 = smov %s2491_s15  ;;  %23 = sbr.rel (!%p21_p0) target bundleno = 7 (0x7), region = 105 }
 0x7da   :  { %1591 = vsyncpa [#allocation4], 1 }
 0x7db   :  { %1593 = vsyncpa [#allocation4 + $0x1], 1 }
 0x7dc   :  { %1594 = vsyncpa [#allocation7], 1 }
 0x7dd   :  { %1595 = vsyncpa [#allocation10], 1 }
 0x7de   :  { %1596 = vsyncpa [#allocation5], 1 }
 0x7df   :  { %1598 = vsyncpa [#allocation5 + $0x1], 1 }

</bundles_post_ra>
